<compile_context>
chip_gen: v7x
topology: tpu7x:2x2x1
jax: 0.10.0
libtpu: 0.0.40
codegen_flags: <defaults>
</compile_context>

<pallas_src>
import jax
import jax.numpy as jnp
from jax.experimental import pallas as pl


# -----------------------------------------------------------------------------
# Pallas kernel
# -----------------------------------------------------------------------------
def _full_spec(shape):
    nd = len(shape)
    return pl.BlockSpec(shape, lambda: (0,) * nd)


def _build_fused_kernel(cfg):
    """Builds the single fused forward kernel for a given static config."""
    pred_keys = cfg["pred_keys"]
    n_pred = len(pred_keys)
    order = cfg["order"]
    offsets = cfg["offsets"]
    z_dict = cfg["z_dict"]
    swap = cfg["swap"]

    def kernel(*refs):
        it = iter(refs)
        # ---- inputs -----------------------------------------------------------
        patches_ref = next(it)      # (M, K)        bf16
        enc_w_ref = next(it)        # (K, Cf)       bf16
        pool_ref = next(it)         # (N, M)        f32  (global-avg-pool matrix)
        encfc_w_ref = next(it)      # (Cf, z_dim)   f32  (all heads fused)
        encfc_b_ref = next(it)      # (1, z_dim)
        pred_params = [(next(it), next(it), next(it), next(it))
                       for _ in range(n_pred)]
        dec_fc_w_ref = next(it)     # (z_dim, Cd*P)
        dec_fc_b_ref = next(it)     # (1, Cd*P)
        dec_cw_ref = next(it)       # (Cd*P, 3*P)   block-diag commuted 1x1 conv
        dec_cb_ref = next(it)       # (1, 3*P)
        # ---- outputs ----------------------------------------------------------
        z_all_ref = next(it)        # (N, z_dim)    post-swap latent concat
        pred_out_refs = [next(it) for _ in range(n_pred)]
        x_small_ref = next(it)      # (N, 3*P)      3-channel bottleneck map

        # --- encoder: patch-embed conv as matmul (bf16 in, f32 acc) + ReLU -----
        feat = jnp.dot(patches_ref[...], enc_w_ref[...],
                       preferred_element_type=jnp.float32)
        feat = jnp.maximum(feat, 0.0)                               # (M, Cf)

        # --- features.mean(-1).mean(-1): global average pool as tiny matmul ----
        gap = jnp.dot(pool_ref[...], feat,
                      preferred_element_type=jnp.float32)           # (N, Cf)

        # --- all encoder_fc heads as one fused matmul ---------------------------
        lat = (jnp.dot(gap, encfc_w_ref[...],
                       preferred_element_type=jnp.float32)
               + encfc_b_ref[...])                                  # (N, z_dim)

        # --- prediction nets (on the UNswapped codes, as in the reference) -----
        for (w1, b1, w2, b2), oref, k in zip(pred_params, pred_out_refs,
                                             pred_keys):
            off, zk = offsets[k], z_dict[k]
            lk = lat[:, off:off + zk]
            h1 = jnp.maximum(
                jnp.dot(lk, w1[...], preferred_element_type=jnp.float32)
                + b1[...], 0.0)
            # TODO(synk): Dropout(0.5) is eval-mode identity (deterministic).
            oref[...] = (jnp.dot(h1, w2[...],
                                 preferred_element_type=jnp.float32)
                         + b2[...]).astype(oref.dtype)

        # --- half-swap selected codes, concat in latent_code_order --------------
        segs = []
        for k in order:
            off, zk = offsets[k], z_dict[k]
            seg = lat[:, off:off + zk]
            if k in swap:
                h = zk // 2
                seg = jnp.concatenate([seg[:, h:], seg[:, :h]], axis=-1)
            segs.append(seg)
        z_all = segs[0] if len(segs) == 1 else jnp.concatenate(segs, axis=-1)
        z_all_ref[...] = z_all.astype(z_all_ref.dtype)

        # --- decoder: fc -> ReLU -> commuted 1x1 conv at bottleneck resolution --
        dec_h = jnp.maximum(
            jnp.dot(z_all, dec_fc_w_ref[...],
                    preferred_element_type=jnp.float32)
            + dec_fc_b_ref[...], 0.0)                               # (N, Cd*P)
        x_small = (jnp.dot(dec_h, dec_cw_ref[...],
                           preferred_element_type=jnp.float32)
                   + dec_cb_ref[...])                               # (N, 3*P)
        x_small_ref[...] = x_small.astype(x_small_ref.dtype)

    return kernel


# -----------------------------------------------------------------------------
# Model
# -----------------------------------------------------------------------------
def _init_linear(key, fan_in, fan_out, scale=0.02):
    kw, kb = jax.random.split(key)
    w = scale * jax.random.normal(kw, (fan_in, fan_out), dtype=jnp.float32)
    b = scale * jax.random.normal(kb, (fan_out,), dtype=jnp.float32)
    return w, b


class CXRCrossEncoderPallas:
    PATCH = 32           # total downsampling factor of the encoder (=resnet /32)
    FEAT_CHANNELS = 64   # stand-in for resnet18's 512 final channels
    DEC_CHANNELS = 64    # stand-in for the 2048-channel bottleneck
    PRED_HIDDEN = 256    # hardcoded in the PyTorch module

    def __init__(self, z_dict, swap_list, pred_dict, latent_code_order,
                 input_shape=(2, 6, 64, 64), param_key=None):
        _, in_c, org_h, org_w = input_shape
        assert in_c == 6
        self.bh = org_h // self.PATCH
        self.bw = org_w // self.PATCH
        self.P = self.bh * self.bw
        print('bottle_neck size: ', self.bh, self.bw)

        self.z_dict = dict(z_dict)
        self.swap_list = list(swap_list)
        self.pred_dict = dict(pred_dict)
        self.latent_code_order = list(latent_code_order)
        assert len(self.latent_code_order) == len(self.z_dict.keys())
        self.z_dim = sum(self.z_dict.values())

        # column offsets of each latent code in latent_code_order (== z_all order)
        self.offsets = {}
        off = 0
        for k in self.latent_code_order:
            self.offsets[k] = off
            off += self.z_dict[k]

        if param_key is None:
            param_key = jax.random.PRNGKey(0)
        keys = jax.random.split(param_key, 4 + len(z_dict) + 2 * len(pred_dict))
        ki = iter(keys)

        # encoder stand-in: patch-embedding conv (6 -> FEAT_CHANNELS, 32x32/s32,
        # bias=False as in conv1).  Weight stored bf16; MXU accumulates in f32.
        k_patch = in_c * self.PATCH * self.PATCH
        enc_w, _ = _init_linear(next(ki), k_patch, self.FEAT_CHANNELS)
        self.enc_w = enc_w.astype(jnp.bfloat16)

        # encoder_fc[k]: Linear(FEAT_CHANNELS, z_dict[k]); fused into one matmul
        self.encoder_fc = {}
        for k in self.latent_code_order:
            self.encoder_fc[k] = _init_linear(next(ki), self.FEAT_CHANNELS,
                                              self.z_dict[k])
        self.encfc_w = jnp.concatenate(
            [self.encoder_fc[k][0] for k in self.latent_code_order], axis=1)
        self.encfc_b = jnp.concatenate(
            [self.encoder_fc[k][1] for k in self.latent_code_order]).reshape(1, -1)

        # prediction_net[k]: Linear(z, 256) -> ReLU -> Dropout -> Linear(256, 2v)
        self.pred_keys = list(self.pred_dict.keys())
        self.prediction_net = {}
        for k in self.pred_keys:
            v = self.pred_dict[k]
            w1, b1 = _init_linear(next(ki), self.z_dict[k], self.PRED_HIDDEN)
            w2, b2 = _init_linear(next(ki), self.PRED_HIDDEN, 2 * v)
            self.prediction_net[k] = (w1, b1.reshape(1, -1), w2, b2.reshape(1, -1))

        # decoder stand-in: Linear(z_dim -> Cd*bh*bw) -> ReLU -> 1x1 conv.
        self.dec_fc_w, dec_fc_b = _init_linear(
            next(ki), self.z_dim, self.DEC_CHANNELS * self.P)
        self.dec_fc_b = dec_fc_b.reshape(1, -1)
        dec_out_w, dec_out_b = _init_linear(next(ki), self.DEC_CHANNELS, 3)

        # Commuted 1x1 conv (nearest upsample commutes with a per-pixel linear
        # map): block-diagonal (Cd*P, 3*P) matrix so that
        #   x_small[n, k*P + p] = sum_c dec_h[n, c*P + p] * dec_out_w[c, k] + b[k]
        eye_p = jnp.eye(self.P, dtype=jnp.float32)
        self.dec_comb_w = jnp.einsum('ck,pq->cpkq', dec_out_w, eye_p).reshape(
            self.DEC_CHANNELS * self.P, 3 * self.P)
        self.dec_comb_b = jnp.repeat(dec_out_b, self.P).reshape(1, -1)

        self._cfg = dict(pred_keys=self.pred_keys, order=self.latent_code_order,
                         offsets=self.offsets, z_dict=self.z_dict,
                         swap=set(self.swap_list))
        self._kernel = _build_fused_kernel(self._cfg)

    # ------------------------------------------------------------------ forward
    def forward(self, x):
        N, C, H, W = x.shape
        ps = self.PATCH
        bh, bw = H // ps, W // ps
        assert (bh, bw) == (self.bh, self.bw)
        P = bh * bw
        M = N * P

        # --- patchify NCHW -> (N*P, C*ps*ps); bf16 at the MXU input -------------
        patches = x.reshape(N, C, bh, ps, bw, ps).transpose(0, 2, 4, 1, 3, 5)
        patches = patches.reshape(M, C * ps * ps).astype(jnp.bfloat16)

        # global-average-pool expressed as a tiny (N, M) pooling matmul
        pool_mat = jnp.repeat(jnp.eye(N, dtype=jnp.float32), P, axis=1) / float(P)

        in_arrays = [patches, self.enc_w, pool_mat, self.encfc_w, self.encfc_b]
        for k in self.pred_keys:
            in_arrays.extend(self.prediction_net[k])
        in_arrays.extend([self.dec_fc_w, self.dec_fc_b,
                          self.dec_comb_w, self.dec_comb_b])

        out_shapes = [jax.ShapeDtypeStruct((N, self.z_dim), jnp.float32)]
        out_shapes += [jax.ShapeDtypeStruct((N, 2 * self.pred_dict[k]),
                                            jnp.float32) for k in self.pred_keys]
        out_shapes += [jax.ShapeDtypeStruct((N, 3 * P), jnp.float32)]

        outs = pl.pallas_call(
            self._kernel,
            out_shape=tuple(out_shapes),
            in_specs=[_full_spec(tuple(a.shape)) for a in in_arrays],
            out_specs=tuple(_full_spec(tuple(s.shape)) for s in out_shapes),
        )(*in_arrays)

        z_all = outs[0]
        pred = {k: outs[1 + i] for i, k in enumerate(self.pred_keys)}
        x_small = outs[-1]

        # latent_code dict holds the POST-swap codes (as in the reference forward)
        latent_code = {
            k: z_all[:, self.offsets[k]:self.offsets[k] + self.z_dict[k]]
            for k in self.latent_code_order}

        # x32 nearest-neighbour upsample of the 3-channel bottleneck map (glue)
        x_hat = x_small.reshape(N, 3, bh, bw)
        x_hat = jnp.repeat(jnp.repeat(x_hat, ps, axis=2), ps, axis=3)  # NCHW

        return {"latent_code_dict": latent_code, "pred": pred, "x_hat": x_hat}


# -----------------------------------------------------------------------------
# main
# -----------------------------------------------------------------------------
if __name__ == "__main__":
    z_dict = {"disease": 16, "style": 16}
    swap_list = ["style"]
    pred_dict = {"disease": 4}
    latent_code_order = ["disease", "style"]

    key = jax.random.PRNGKey(0)
    k_x, k_params = jax.random.split(key)

    model = CXRCrossEncoderPallas(
        z_dict, swap_list, pred_dict, latent_code_order,
        input_shape=(2, 6, 64, 64), param_key=k_params)

    x = jax.random.normal(k_x, (2, 6, 64, 64), dtype=jnp.float32)

    fwd = jax.jit(model.forward)
    out = fwd(x)
    out = jax.block_until_ready(out)

    assert out["x_hat"].shape == (2, 3, 64, 64)
    assert out["latent_code_dict"]["disease"].shape == (2, 16)
    assert out["latent_code_dict"]["style"].shape == (2, 16)
    assert out["pred"]["disease"].shape == (2, 8)
    print("KERNEL_OK")
</pallas_src>

<mosaic_0001>
module attributes {stable_mosaic.version = 11 : i64} {
  func.func @kernel(%arg0: memref<8x6144xbf16, #tpu.memory_space<vmem>>, %arg1: memref<6144x64xbf16, #tpu.memory_space<vmem>>, %arg2: memref<2x8xf32, #tpu.memory_space<vmem>>, %arg3: memref<64x32xf32, #tpu.memory_space<vmem>>, %arg4: memref<1x32xf32, #tpu.memory_space<vmem>>, %arg5: memref<16x256xf32, #tpu.memory_space<vmem>>, %arg6: memref<1x256xf32, #tpu.memory_space<vmem>>, %arg7: memref<256x8xf32, #tpu.memory_space<vmem>>, %arg8: memref<1x8xf32, #tpu.memory_space<vmem>>, %arg9: memref<32x256xf32, #tpu.memory_space<vmem>>, %arg10: memref<1x256xf32, #tpu.memory_space<vmem>>, %arg11: memref<256x12xf32, #tpu.memory_space<vmem>>, %arg12: memref<1x12xf32, #tpu.memory_space<vmem>>, %arg13: memref<2x32xf32, #tpu.memory_space<vmem>>, %arg14: memref<2x8xf32, #tpu.memory_space<vmem>>, %arg15: memref<2x12xf32, #tpu.memory_space<vmem>>) attributes {dimension_semantics = [], scalar_prefetch = 0 : i64, scratch_operands = 0 : i64, tpu.core_type = #tpu.core_type<tc>} {
    %c0 = arith.constant 0 : index
    %c0_0 = arith.constant 0 : index
    %0 = vector.load %arg0[%c0, %c0_0] : memref<8x6144xbf16, #tpu.memory_space<vmem>>, vector<8x6144xbf16>
    %c0_1 = arith.constant 0 : index
    %c0_2 = arith.constant 0 : index
    %1 = vector.load %arg1[%c0_1, %c0_2] : memref<6144x64xbf16, #tpu.memory_space<vmem>>, vector<6144x64xbf16>
    %cst = arith.constant dense<0.000000e+00> : vector<8x64xf32>
    %2 = tpu.matmul %0, %1, %cst {dimension_numbers = #tpu.dot_dimension_numbers<[1], [0], [0], [1], [0, 0, 1, 1], [], []>} : vector<8x6144xbf16>, vector<6144x64xbf16>, vector<8x64xf32> -> vector<8x64xf32>
    %cst_3 = arith.constant 0.000000e+00 : f32
    %3 = vector.broadcast %cst_3 : f32 to vector<8x64xf32>
    %4 = arith.maximumf %2, %3 : vector<8x64xf32>
    %c0_4 = arith.constant 0 : index
    %c0_5 = arith.constant 0 : index
    %5 = vector.load %arg2[%c0_4, %c0_5] : memref<2x8xf32, #tpu.memory_space<vmem>>, vector<2x8xf32>
    %cst_6 = arith.constant dense<0.000000e+00> : vector<2x64xf32>
    %6 = tpu.matmul %5, %4, %cst_6 {dimension_numbers = #tpu.dot_dimension_numbers<[1], [0], [0], [1], [0, 0, 1, 1], [], []>} : vector<2x8xf32>, vector<8x64xf32>, vector<2x64xf32> -> vector<2x64xf32>
    %c0_7 = arith.constant 0 : index
    %c0_8 = arith.constant 0 : index
    %7 = vector.load %arg3[%c0_7, %c0_8] : memref<64x32xf32, #tpu.memory_space<vmem>>, vector<64x32xf32>
    %cst_9 = arith.constant dense<0.000000e+00> : vector<2x32xf32>
    %8 = tpu.matmul %6, %7, %cst_9 {dimension_numbers = #tpu.dot_dimension_numbers<[1], [0], [0], [1], [0, 0, 1, 1], [], []>} : vector<2x64xf32>, vector<64x32xf32>, vector<2x32xf32> -> vector<2x32xf32>
    %c0_10 = arith.constant 0 : index
    %c0_11 = arith.constant 0 : index
    %9 = vector.load %arg4[%c0_10, %c0_11] : memref<1x32xf32, #tpu.memory_space<vmem>>, vector<1x32xf32>
    %10 = vector.broadcast %9 : vector<1x32xf32> to vector<2x32xf32>
    %11 = arith.addf %8, %10 : vector<2x32xf32>
    %12 = vector.extract_strided_slice %11 {offsets = [0, 0], sizes = [2, 16], strides = [1, 1]} : vector<2x32xf32> to vector<2x16xf32>
    %c0_12 = arith.constant 0 : index
    %c0_13 = arith.constant 0 : index
    %13 = vector.load %arg5[%c0_12, %c0_13] : memref<16x256xf32, #tpu.memory_space<vmem>>, vector<16x256xf32>
    %cst_14 = arith.constant dense<0.000000e+00> : vector<2x256xf32>
    %14 = tpu.matmul %12, %13, %cst_14 {dimension_numbers = #tpu.dot_dimension_numbers<[1], [0], [0], [1], [0, 0, 1, 1], [], []>} : vector<2x16xf32>, vector<16x256xf32>, vector<2x256xf32> -> vector<2x256xf32>
    %c0_15 = arith.constant 0 : index
    %c0_16 = arith.constant 0 : index
    %15 = vector.load %arg6[%c0_15, %c0_16] : memref<1x256xf32, #tpu.memory_space<vmem>>, vector<1x256xf32>
    %16 = vector.broadcast %15 : vector<1x256xf32> to vector<2x256xf32>
    %17 = arith.addf %14, %16 : vector<2x256xf32>
    %cst_17 = arith.constant 0.000000e+00 : f32
    %18 = vector.broadcast %cst_17 : f32 to vector<2x256xf32>
    %19 = arith.maximumf %17, %18 : vector<2x256xf32>
    %c0_18 = arith.constant 0 : index
    %c0_19 = arith.constant 0 : index
    %20 = vector.load %arg7[%c0_18, %c0_19] : memref<256x8xf32, #tpu.memory_space<vmem>>, vector<256x8xf32>
    %cst_20 = arith.constant dense<0.000000e+00> : vector<2x8xf32>
    %21 = tpu.matmul %19, %20, %cst_20 {dimension_numbers = #tpu.dot_dimension_numbers<[1], [0], [0], [1], [0, 0, 1, 1], [], []>} : vector<2x256xf32>, vector<256x8xf32>, vector<2x8xf32> -> vector<2x8xf32>
    %c0_21 = arith.constant 0 : index
    %c0_22 = arith.constant 0 : index
    %22 = vector.load %arg8[%c0_21, %c0_22] : memref<1x8xf32, #tpu.memory_space<vmem>>, vector<1x8xf32>
    %23 = vector.broadcast %22 : vector<1x8xf32> to vector<2x8xf32>
    %24 = arith.addf %21, %23 : vector<2x8xf32>
    %c0_23 = arith.constant 0 : index
    %c0_24 = arith.constant 0 : index
    %25 = vector.load %arg14[%c0_23, %c0_24] : memref<2x8xf32, #tpu.memory_space<vmem>>, vector<2x8xf32>
    tpu.vector_store %arg14[%c0_23, %c0_24], %24 {strides = array<i32>} : memref<2x8xf32, #tpu.memory_space<vmem>>, vector<2x8xf32>,
    %26 = vector.extract_strided_slice %11 {offsets = [0, 0], sizes = [2, 16], strides = [1, 1]} : vector<2x32xf32> to vector<2x16xf32>
    %27 = vector.extract_strided_slice %11 {offsets = [0, 16], sizes = [2, 16], strides = [1, 1]} : vector<2x32xf32> to vector<2x16xf32>
    %28 = vector.extract_strided_slice %27 {offsets = [0, 8], sizes = [2, 8], strides = [1, 1]} : vector<2x16xf32> to vector<2x8xf32>
    %29 = vector.extract_strided_slice %27 {offsets = [0, 0], sizes = [2, 8], strides = [1, 1]} : vector<2x16xf32> to vector<2x8xf32>
    %30 = tpu.concatenate %28, %29 in 1 : vector<2x8xf32>, vector<2x8xf32> -> vector<2x16xf32>
    %31 = tpu.concatenate %26, %30 in 1 : vector<2x16xf32>, vector<2x16xf32> -> vector<2x32xf32>
    %c0_25 = arith.constant 0 : index
    %c0_26 = arith.constant 0 : index
    %32 = vector.load %arg13[%c0_25, %c0_26] : memref<2x32xf32, #tpu.memory_space<vmem>>, vector<2x32xf32>
    tpu.vector_store %arg13[%c0_25, %c0_26], %31 {strides = array<i32>} : memref<2x32xf32, #tpu.memory_space<vmem>>, vector<2x32xf32>,
    %c0_27 = arith.constant 0 : index
    %c0_28 = arith.constant 0 : index
    %33 = vector.load %arg9[%c0_27, %c0_28] : memref<32x256xf32, #tpu.memory_space<vmem>>, vector<32x256xf32>
    %cst_29 = arith.constant dense<0.000000e+00> : vector<2x256xf32>
    %34 = tpu.matmul %31, %33, %cst_29 {dimension_numbers = #tpu.dot_dimension_numbers<[1], [0], [0], [1], [0, 0, 1, 1], [], []>} : vector<2x32xf32>, vector<32x256xf32>, vector<2x256xf32> -> vector<2x256xf32>
    %c0_30 = arith.constant 0 : index
    %c0_31 = arith.constant 0 : index
    %35 = vector.load %arg10[%c0_30, %c0_31] : memref<1x256xf32, #tpu.memory_space<vmem>>, vector<1x256xf32>
    %36 = vector.broadcast %35 : vector<1x256xf32> to vector<2x256xf32>
    %37 = arith.addf %34, %36 : vector<2x256xf32>
    %cst_32 = arith.constant 0.000000e+00 : f32
    %38 = vector.broadcast %cst_32 : f32 to vector<2x256xf32>
    %39 = arith.maximumf %37, %38 : vector<2x256xf32>
    %c0_33 = arith.constant 0 : index
    %c0_34 = arith.constant 0 : index
    %40 = vector.load %arg11[%c0_33, %c0_34] : memref<256x12xf32, #tpu.memory_space<vmem>>, vector<256x12xf32>
    %cst_35 = arith.constant dense<0.000000e+00> : vector<2x12xf32>
    %41 = tpu.matmul %39, %40, %cst_35 {dimension_numbers = #tpu.dot_dimension_numbers<[1], [0], [0], [1], [0, 0, 1, 1], [], []>} : vector<2x256xf32>, vector<256x12xf32>, vector<2x12xf32> -> vector<2x12xf32>
    %c0_36 = arith.constant 0 : index
    %c0_37 = arith.constant 0 : index
    %42 = vector.load %arg12[%c0_36, %c0_37] : memref<1x12xf32, #tpu.memory_space<vmem>>, vector<1x12xf32>
    %43 = vector.broadcast %42 : vector<1x12xf32> to vector<2x12xf32>
    %44 = arith.addf %41, %43 : vector<2x12xf32>
    %c0_38 = arith.constant 0 : index
    %c0_39 = arith.constant 0 : index
    %45 = vector.load %arg15[%c0_38, %c0_39] : memref<2x12xf32, #tpu.memory_space<vmem>>, vector<2x12xf32>
    tpu.vector_store %arg15[%c0_38, %c0_39], %44 {strides = array<i32>} : memref<2x12xf32, #tpu.memory_space<vmem>>, vector<2x12xf32>,
    return
  }
}

</mosaic_0001>

<bundles_post_ra>
// kernel: forward.1
= control target key start
LH: loop header
LB: loop body
LE: loop exit
PB: predicated region body
PF: predicated region fallthrough
CT: control target
= control target key end

     0   :  { %s8147_s0 = inlined_call_operand.vmem [shape: bf16[8,6144], index: 0, kind: input, shape index: {}]   ;;  %s8148_s1 = inlined_call_operand.vmem [shape: bf16[6144,64], index: 1, kind: input, shape index: {}]   ;;  %s8149_s2 = inlined_call_operand.vmem [shape: f32[2,8], index: 2, kind: input, shape index: {}]   ;;  %s8150_s3 = inlined_call_operand.vmem [shape: f32[64,32], index: 3, kind: input, shape index: {}]   ;;  %s8151_s4 = inlined_call_operand.vmem [shape: f32[1,32], index: 4, kind: input, shape index: {}]   ;;  %s8152_s5 = inlined_call_operand.vmem [shape: f32[16,256], index: 5, kind: input, shape index: {}]   ;;  %s8153_s6 = inlined_call_operand.vmem [shape: f32[1,256], index: 6, kind: input, shape index: {}]   ;;  %s8154_s7 = inlined_call_operand.vmem [shape: f32[256,8], index: 7, kind: input, shape index: {}]   ;;  %s8155_s8 = inlined_call_operand.vmem [shape: f32[1,8], index: 8, kind: input, shape index: {}]   ;;  %s8156_s9 = inlined_call_operand.vmem [shape: f32[32,256], index: 9, kind: input, shape index: {}]   ;;  %s8157_s10 = inlined_call_operand.vmem [shape: f32[1,256], index: 10, kind: input, shape index: {}]   ;;  %s8158_s11 = inlined_call_operand.vmem [shape: f32[256,12], index: 11, kind: input, shape index: {}]   ;;  %s8159_s12 = inlined_call_operand.vmem [shape: f32[1,12], index: 12, kind: input, shape index: {}]   ;;  %s8160_s13 = inlined_call_operand.vmem [shape: f32[2,32], index: 13, kind: output, shape index: {0}]   ;;  %s8161_s14 = inlined_call_operand.hbm [shape: f32[2,8], index: 14, kind: output, shape index: {1}]   ;;  %s8162_s15 = inlined_call_operand.vmem [shape: f32[2,12], index: 15, kind: output, shape index: {2}]  }
   0x1   :  { %v6053_v0 = vld [vmem:[%s8148_s1 + $0x40] sm:$0xff]   ;;  %v6057_v4 = vld [vmem:[%s8148_s1 + $0x48] sm:$0xff]   ;;  %v6061_v8 = vld [vmem:[%s8148_s1 + $0x50] sm:$0xff]  }
   0x2   :  { %v6054_v1 = vld [vmem:[%s8148_s1 + $0xc0] sm:$0xff]   ;;  %5325 = vmatprep.subr.bf16.mxu0 %v6053_v0  ;;  %v6058_v5 = vld [vmem:[%s8148_s1 + $0xc8] sm:$0xff]   ;;  %v6062_v9 = vld [vmem:[%s8148_s1 + $0xd0] sm:$0xff]  }
   0x3   :  { %v6055_v2 = vld [vmem:[%s8148_s1] sm:$0xff]   ;;  %5347 = vmatprep.subr.bf16.mxu1 %v6054_v1  ;;  %v6059_v6 = vld [vmem:[%s8148_s1 + $0x8] sm:$0xff]   ;;  %v6063_v10 = vld [vmem:[%s8148_s1 + $0x10] sm:$0xff]  }
   0x4   :  { %v6056_v3 = vld [vmem:[%s8148_s1 + $0x80] sm:$0xff]   ;;  %5326 = vmatpush3.bf16.msra.mxu0 %v6055_v2  ;;  %v6060_v7 = vld [vmem:[%s8148_s1 + $0x88] sm:$0xff]   ;;  %v6064_v11 = vld [vmem:[%s8148_s1 + $0x90] sm:$0xff]  }
   0x5   :  { %5348 = vmatpush3.bf16.msra.mxu1 %v6056_v3  ;;  %5327 = vmatprep.subr.bf16.mxu0 %v6057_v4  ;;  %v6065_v12 = vld [vmem:[%s8148_s1 + $0x58] sm:$0xff]   ;;  %v6069_v16 = vld [vmem:[%s8148_s1 + $0x60] sm:$0xff]   ;;  %v6073_v20 = vld [vmem:[%s8148_s1 + $0x68] sm:$0xff]  }
   0x6   :  { %5349 = vmatprep.subr.bf16.mxu1 %v6058_v5  ;;  %v6066_v13 = vld [vmem:[%s8148_s1 + $0xd8] sm:$0xff]   ;;  %v6070_v17 = vld [vmem:[%s8148_s1 + $0xe0] sm:$0xff]   ;;  %v6074_v21 = vld [vmem:[%s8148_s1 + $0xe8] sm:$0xff]  }
   0x7   :  { %v6067_v14 = vld [vmem:[%s8148_s1 + $0x18] sm:$0xff]   ;;  %v6071_v18 = vld [vmem:[%s8148_s1 + $0x20] sm:$0xff]   ;;  %v6075_v22 = vld [vmem:[%s8148_s1 + $0x28] sm:$0xff]  }
   0x8   :  { %5328 = vmatpush3.bf16.msra.mxu0 %v6059_v6  ;;  %v6068_v15 = vld [vmem:[%s8148_s1 + $0x98] sm:$0xff]   ;;  %v6072_v19 = vld [vmem:[%s8148_s1 + $0xa0] sm:$0xff]   ;;  %v6076_v23 = vld [vmem:[%s8148_s1 + $0xa8] sm:$0xff]  }
   0x9   :  { %5350 = vmatpush3.bf16.msra.mxu1 %v6060_v7  ;;  %5329 = vmatprep.subr.bf16.mxu0 %v6061_v8  ;;  %v6077_v24 = vld [vmem:[%s8148_s1 + $0x70] sm:$0xff]   ;;  %v6081_v28 = vld [vmem:[%s8148_s1 + $0x78] sm:$0xff]   ;;  %v49_v32 = vld [vmem:[%s8147_s0] sm:$0xff] }
   0xa   :  { %5351 = vmatprep.subr.bf16.mxu1 %v6062_v9  ;;  %v6078_v25 = vld [vmem:[%s8148_s1 + $0xf0] sm:$0xff]   ;;  %v6082_v29 = vld [vmem:[%s8148_s1 + $0xf8] sm:$0xff]   ;;  %v50_v33 = vld [vmem:[%s8147_s0 + $0x8] sm:$0xff]  ;;  %v4886_v34 = vcombine.low %v49_v32, %v49_v32  ;;  %v4887_v35 = vcombine.high %v49_v32, %v49_v32 }
   0xb   :  { %v6079_v26 = vld [vmem:[%s8148_s1 + $0x30] sm:$0xff]   ;;  %v6083_v30 = vld [vmem:[%s8148_s1 + $0x38] sm:$0xff]   ;;  %v4888_v36 = vcombine.low %v50_v33, %v50_v33  ;;  %v4889_v37 = vcombine.high %v50_v33, %v50_v33  ;;  %v6089_v38 = vld [vmem:[%s8148_s1 + $0x140] sm:$0xff]  }
   0xc   :  { %5330 = vmatpush3.bf16.msra.mxu0 %v6063_v10  ;;  %v6080_v27 = vld [vmem:[%s8148_s1 + $0xb0] sm:$0xff]   ;;  %v6084_v31 = vld [vmem:[%s8148_s1 + $0xb8] sm:$0xff]   ;;  %v6090_v39 = vld [vmem:[%s8148_s1 + $0x1c0] sm:$0xff]   ;;  %3345 = vmatprep.mubr.bf16.mxu0 %v4887_v35 }
   0xd   :  { %5352 = vmatpush3.bf16.msra.mxu1 %v6064_v11  ;;  %5331 = vmatprep.subr.bf16.mxu0 %v6065_v12  ;;  %v6091_v40 = vld [vmem:[%s8148_s1 + $0x100] sm:$0xff]   ;;  %v6093_v42 = vld [vmem:[%s8148_s1 + $0x148] sm:$0xff]   ;;  %v6097_v46 = vld [vmem:[%s8148_s1 + $0x150] sm:$0xff]  }
   0xe   :  { %5353 = vmatprep.subr.bf16.mxu1 %v6066_v13  ;;  %3385 = vmatprep.mubr.bf16.mxu1 %v4889_v37  ;;  %v6092_v41 = vld [vmem:[%s8148_s1 + $0x180] sm:$0xff]   ;;  %v6094_v43 = vld [vmem:[%s8148_s1 + $0x1c8] sm:$0xff]   ;;  %v6098_v47 = vld [vmem:[%s8148_s1 + $0x1d0] sm:$0xff]  }
   0xf   :  { %v6095_v44 = vld [vmem:[%s8148_s1 + $0x108] sm:$0xff]   ;;  %v6099_v48 = vld [vmem:[%s8148_s1 + $0x110] sm:$0xff]   ;;  %v6101_v50 = vld [vmem:[%s8148_s1 + $0x158] sm:$0xff]  }
  0x10   :  { %5332 = vmatpush3.bf16.msra.mxu0 %v6067_v14  ;;  %v6096_v45 = vld [vmem:[%s8148_s1 + $0x188] sm:$0xff]   ;;  %v6100_v49 = vld [vmem:[%s8148_s1 + $0x190] sm:$0xff]   ;;  %v6102_v51 = vld [vmem:[%s8148_s1 + $0x1d8] sm:$0xff]  }
  0x11   :  { %5354 = vmatpush3.bf16.msra.mxu1 %v6068_v15  ;;  %5333 = vmatprep.subr.bf16.mxu0 %v6069_v16  ;;  %v6103_v52 = vld [vmem:[%s8148_s1 + $0x118] sm:$0xff]   ;;  %v6105_v54 = vld [vmem:[%s8148_s1 + $0x160] sm:$0xff]   ;;  %v6109_v58 = vld [vmem:[%s8148_s1 + $0x168] sm:$0xff]  }
  0x12   :  { %5355 = vmatprep.subr.bf16.mxu1 %v6070_v17  ;;  %v6104_v53 = vld [vmem:[%s8148_s1 + $0x198] sm:$0xff]   ;;  %v6106_v55 = vld [vmem:[%s8148_s1 + $0x1e0] sm:$0xff]   ;;  %v6110_v59 = vld [vmem:[%s8148_s1 + $0x1e8] sm:$0xff]  }
  0x13   :  { %v6107_v56 = vld [vmem:[%s8148_s1 + $0x120] sm:$0xff]   ;;  %v6111_v60 = vld [vmem:[%s8148_s1 + $0x128] sm:$0xff]   ;;  %v6113_v62 = vld [vmem:[%s8148_s1 + $0x170] sm:$0xff]  }
  0x14   :  { %5334 = vmatpush3.bf16.msra.mxu0 %v6071_v18  ;;  %v6108_v57 = vld [vmem:[%s8148_s1 + $0x1a0] sm:$0xff]   ;;  %v6112_v61 = vld [vmem:[%s8148_s1 + $0x1a8] sm:$0xff]   ;;  %v6114_v63 = vld [vmem:[%s8148_s1 + $0x1f0] sm:$0xff]  }
  0x15   :  { %5356 = vmatpush3.bf16.msra.mxu1 %v6072_v19  ;;  %5335 = vmatprep.subr.bf16.mxu0 %v6073_v20  ;;  %v6115_v0 = vld [vmem:[%s8148_s1 + $0x130] sm:$0xff]   ;;  %v6117_v2 = vld [vmem:[%s8148_s1 + $0x178] sm:$0xff]   ;;  %v6125_v12 = vld [vmem:[%s8148_s1 + $0x240] sm:$0xff]  }
  0x16   :  { %5357 = vmatprep.subr.bf16.mxu1 %v6074_v21  ;;  %v6116_v1 = vld [vmem:[%s8148_s1 + $0x1b0] sm:$0xff]   ;;  %v6118_v3 = vld [vmem:[%s8148_s1 + $0x1f8] sm:$0xff]   ;;  %v6126_v13 = vld [vmem:[%s8148_s1 + $0x2c0] sm:$0xff]  }
  0x17   :  { %v6119_v4 = vld [vmem:[%s8148_s1 + $0x138] sm:$0xff]   ;;  %v51_v6 = vld [vmem:[%s8147_s0 + $0x10] sm:$0xff]  ;;  %v6127_v14 = vld [vmem:[%s8148_s1 + $0x200] sm:$0xff]  }
  0x18   :  { %5336 = vmatpush3.bf16.msra.mxu0 %v6075_v22  ;;  %v6120_v5 = vld [vmem:[%s8148_s1 + $0x1b8] sm:$0xff]   ;;  %v4890_v7 = vcombine.low %v51_v6, %v51_v6  ;;  %v4891_v8 = vcombine.high %v51_v6, %v51_v6  ;;  %v6128_v15 = vld [vmem:[%s8148_s1 + $0x280] sm:$0xff]   ;;  %v6129_v16 = vld [vmem:[%s8148_s1 + $0x248] sm:$0xff]  }
  0x19   :  { %5358 = vmatpush3.bf16.msra.mxu1 %v6076_v23  ;;  %5337 = vmatprep.subr.bf16.mxu0 %v6077_v24  ;;  %v52_v9 = vld [vmem:[%s8147_s0 + $0x18] sm:$0xff]  ;;  %v6130_v17 = vld [vmem:[%s8148_s1 + $0x2c8] sm:$0xff]   ;;  %v6133_v20 = vld [vmem:[%s8148_s1 + $0x250] sm:$0xff]  }
  0x1a   :  { %5359 = vmatprep.subr.bf16.mxu1 %v6078_v25  ;;  %v4892_v10 = vcombine.low %v52_v9, %v52_v9  ;;  %v4893_v11 = vcombine.high %v52_v9, %v52_v9  ;;  %v6131_v18 = vld [vmem:[%s8148_s1 + $0x208] sm:$0xff]   ;;  %v6134_v21 = vld [vmem:[%s8148_s1 + $0x2d0] sm:$0xff]   ;;  %v6137_v24 = vld [vmem:[%s8148_s1 + $0x258] sm:$0xff]  }
  0x1b   :  { %v6132_v19 = vld [vmem:[%s8148_s1 + $0x288] sm:$0xff]   ;;  %v6135_v22 = vld [vmem:[%s8148_s1 + $0x210] sm:$0xff]   ;;  %v6138_v25 = vld [vmem:[%s8148_s1 + $0x2d8] sm:$0xff]  }
  0x1c   :  { %5338 = vmatpush3.bf16.msra.mxu0 %v6079_v26  ;;  %v6136_v23 = vld [vmem:[%s8148_s1 + $0x290] sm:$0xff]   ;;  %v6139_v26 = vld [vmem:[%s8148_s1 + $0x218] sm:$0xff]   ;;  %v6145_v32 = vld [vmem:[%s8148_s1 + $0x268] sm:$0xff]  }
  0x1d   :  { %5360 = vmatpush3.bf16.msra.mxu1 %v6080_v27  ;;  %5339 = vmatprep.subr.bf16.mxu0 %v6081_v28  ;;  %v6140_v27 = vld [vmem:[%s8148_s1 + $0x298] sm:$0xff]   ;;  %v6141_v28 = vld [vmem:[%s8148_s1 + $0x260] sm:$0xff]   ;;  %v6146_v33 = vld [vmem:[%s8148_s1 + $0x2e8] sm:$0xff]  }
  0x1e   :  { %5361 = vmatprep.subr.bf16.mxu1 %v6082_v29  ;;  %v6142_v29 = vld [vmem:[%s8148_s1 + $0x2e0] sm:$0xff]   ;;  %v6148_v35 = vld [vmem:[%s8148_s1 + $0x2a8] sm:$0xff]   ;;  %v6150_v37 = vld [vmem:[%s8148_s1 + $0x2f0] sm:$0xff]  }
  0x1f   :  { %v6181_v6 = vld [vmem:[%s8148_s1 + $0x368] sm:$0xff]  }
  0x20   :  { %5340 = vmatpush3.bf16.msra.mxu0 %v6083_v30  ;;  %v6143_v30 = vld [vmem:[%s8148_s1 + $0x220] sm:$0xff]   ;;  %v6184_v9 = vld [vmem:[%s8148_s1 + $0x3a8] sm:$0xff]  }
  0x21   :  { %5362 = vmatpush3.bf16.msra.mxu1 %v6084_v31  ;;  %5369 = vmatprep.subr.bf16.mxu0 %v6089_v38  ;;  %v6144_v31 = vld [vmem:[%s8148_s1 + $0x2a0] sm:$0xff]   ;;  %v6151_v38 = vld [vmem:[%s8148_s1 + $0x230] sm:$0xff]  }
  0x22   :  { %5391 = vmatprep.subr.bf16.mxu1 %v6090_v39  ;;  %v6152_v39 = vld [vmem:[%s8148_s1 + $0x2b0] sm:$0xff]  }
  0x23   :  { %3346 = vmatmul.mubr.bf16.vlgmr.msra.gmra.mrb[0].mxu0 %v4886_v34  ;;  %v6147_v34 = vld [vmem:[%s8148_s1 + $0x228] sm:$0xff]  }
  0x24   :  { %3386 = vmatmul.mubr.bf16.vlgmr.msra.gmra.mrb[0].mxu1 %v4888_v36  ;;  %5370 = vmatpush3.bf16.msra.mxu0 %v6091_v40  ;;  %v6149_v36 = vld [vmem:[%s8148_s1 + $0x270] sm:$0xff]   ;;  %v6153_v40 = vld [vmem:[%s8148_s1 + $0x278] sm:$0xff]  }
  0x25   :  { %5392 = vmatpush3.bf16.msra.mxu1 %v6092_v41  ;;  %5371 = vmatprep.subr.bf16.mxu0 %v6093_v42  ;;  %v6154_v41 = vld [vmem:[%s8148_s1 + $0x2f8] sm:$0xff]  }
  0x26   :  { %5393 = vmatprep.subr.bf16.mxu1 %v6094_v43  ;;  %3425 = vmatprep.mubr.bf16.mxu0 %v4891_v8  ;;  %v6155_v42 = vld [vmem:[%s8148_s1 + $0x238] sm:$0xff]   ;;  %v6183_v8 = vld [vmem:[%s8148_s1 + $0x328] sm:$0xff]  }
  0x27   :  { %3465 = vmatprep.mubr.bf16.mxu1 %v4893_v11  ;;  %v6156_v43 = vld [vmem:[%s8148_s1 + $0x2b8] sm:$0xff]   ;;  %v6186_v11 = vld [vmem:[%s8148_s1 + $0x3f0] sm:$0xff]  }
  0x28   :  { %5372 = vmatpush3.bf16.msra.mxu0 %v6095_v44  ;;  %v53_v44 = vld [vmem:[%s8147_s0 + $0x20] sm:$0xff] }
  0x29   :  { %5394 = vmatpush3.bf16.msra.mxu1 %v6096_v45  ;;  %5373 = vmatprep.subr.bf16.mxu0 %v6097_v46  ;;  %v54_v45 = vld [vmem:[%s8147_s0 + $0x28] sm:$0xff]  ;;  %v4894_v46 = vcombine.low %v53_v44, %v53_v44 }
  0x2a   :  { %5395 = vmatprep.subr.bf16.mxu1 %v6098_v47  ;;  %v4895_v47 = vcombine.high %v53_v44, %v53_v44  ;;  %v6217_v44 = vld [vmem:[%s8148_s1 + $0x468] sm:$0xff]  }
  0x2c   :  { %5374 = vmatpush3.bf16.msra.mxu0 %v6099_v48  ;;  %v4896_v48 = vcombine.low %v54_v45, %v54_v45 }
  0x2d   :  { %5396 = vmatpush3.bf16.msra.mxu1 %v6100_v49  ;;  %5375 = vmatprep.subr.bf16.mxu0 %v6101_v50  ;;  %v4897_v49 = vcombine.high %v54_v45, %v54_v45  ;;  %v6161_v50 = vld [vmem:[%s8148_s1 + $0x340] sm:$0xff]   ;;  %v6218_v45 = vld [vmem:[%s8148_s1 + $0x4e8] sm:$0xff]  }
  0x2e   :  { %5397 = vmatprep.subr.bf16.mxu1 %v6102_v51  ;;  %v6162_v51 = vld [vmem:[%s8148_s1 + $0x3c0] sm:$0xff]  }
  0x30   :  { %5376 = vmatpush3.bf16.msra.mxu0 %v6103_v52  ;;  %v6163_v52 = vld [vmem:[%s8148_s1 + $0x300] sm:$0xff]  }
  0x31   :  { %5398 = vmatpush3.bf16.msra.mxu1 %v6104_v53  ;;  %5377 = vmatprep.subr.bf16.mxu0 %v6105_v54  ;;  %v6164_v53 = vld [vmem:[%s8148_s1 + $0x380] sm:$0xff]   ;;  %v6165_v54 = vld [vmem:[%s8148_s1 + $0x348] sm:$0xff]  }
  0x32   :  { %5399 = vmatprep.subr.bf16.mxu1 %v6106_v55  ;;  %v6166_v55 = vld [vmem:[%s8148_s1 + $0x3c8] sm:$0xff]  }
  0x34   :  { %5378 = vmatpush3.bf16.msra.mxu0 %v6107_v56  ;;  %v6167_v56 = vld [vmem:[%s8148_s1 + $0x308] sm:$0xff]  }
  0x35   :  { %5400 = vmatpush3.bf16.msra.mxu1 %v6108_v57  ;;  %5379 = vmatprep.subr.bf16.mxu0 %v6109_v58  ;;  %v6168_v57 = vld [vmem:[%s8148_s1 + $0x388] sm:$0xff]   ;;  %v6169_v58 = vld [vmem:[%s8148_s1 + $0x350] sm:$0xff]  }
  0x36   :  { %5401 = vmatprep.subr.bf16.mxu1 %v6110_v59  ;;  %v6170_v59 = vld [vmem:[%s8148_s1 + $0x3d0] sm:$0xff]  }
  0x38   :  { %5380 = vmatpush3.bf16.msra.mxu0 %v6111_v60  ;;  %v6171_v60 = vld [vmem:[%s8148_s1 + $0x310] sm:$0xff]  }
  0x39   :  { %5402 = vmatpush3.bf16.msra.mxu1 %v6112_v61  ;;  %5381 = vmatprep.subr.bf16.mxu0 %v6113_v62  ;;  %v6172_v61 = vld [vmem:[%s8148_s1 + $0x390] sm:$0xff]   ;;  %v6173_v62 = vld [vmem:[%s8148_s1 + $0x358] sm:$0xff]  }
  0x3a   :  { %5403 = vmatprep.subr.bf16.mxu1 %v6114_v63  ;;  %v6174_v63 = vld [vmem:[%s8148_s1 + $0x3d8] sm:$0xff]  }
  0x3c   :  { %5382 = vmatpush3.bf16.msra.mxu0 %v6115_v0  ;;  %v6175_v0 = vld [vmem:[%s8148_s1 + $0x318] sm:$0xff]  }
  0x3d   :  { %5404 = vmatpush3.bf16.msra.mxu1 %v6116_v1  ;;  %5383 = vmatprep.subr.bf16.mxu0 %v6117_v2  ;;  %v6176_v1 = vld [vmem:[%s8148_s1 + $0x398] sm:$0xff]   ;;  %v6177_v2 = vld [vmem:[%s8148_s1 + $0x360] sm:$0xff]  }
  0x3e   :  { %5405 = vmatprep.subr.bf16.mxu1 %v6118_v3  ;;  %v6178_v3 = vld [vmem:[%s8148_s1 + $0x3e0] sm:$0xff]  }
  0x40   :  { %5384 = vmatpush3.bf16.msra.mxu0 %v6119_v4  ;;  %v6179_v4 = vld [vmem:[%s8148_s1 + $0x320] sm:$0xff]  }
  0x41   :  { %5406 = vmatpush3.bf16.msra.mxu1 %v6120_v5  ;;  %5413 = vmatprep.subr.bf16.mxu0 %v6125_v12  ;;  %v6180_v5 = vld [vmem:[%s8148_s1 + $0x3a0] sm:$0xff]   ;;  %v6187_v12 = vld [vmem:[%s8148_s1 + $0x330] sm:$0xff]  }
  0x42   :  { %5435 = vmatprep.subr.bf16.mxu1 %v6126_v13  ;;  %v6188_v13 = vld [vmem:[%s8148_s1 + $0x3b0] sm:$0xff]  }
  0x43   :  { %3426 = vmatmul.mubr.bf16.vlgmr.msra.gmra.mrb[4].mxu0 %v4890_v7  ;;  %v6182_v7 = vld [vmem:[%s8148_s1 + $0x3e8] sm:$0xff]  }
  0x44   :  { %3466 = vmatmul.mubr.bf16.vlgmr.msra.gmra.mrb[4].mxu1 %v4892_v10  ;;  %5414 = vmatpush3.bf16.msra.mxu0 %v6127_v14  ;;  %v6185_v10 = vld [vmem:[%s8148_s1 + $0x370] sm:$0xff]   ;;  %v6189_v14 = vld [vmem:[%s8148_s1 + $0x378] sm:$0xff]  }
  0x45   :  { %5436 = vmatpush3.bf16.msra.mxu1 %v6128_v15  ;;  %5415 = vmatprep.subr.bf16.mxu0 %v6129_v16  ;;  %v6190_v15 = vld [vmem:[%s8148_s1 + $0x3f8] sm:$0xff]  }
  0x46   :  { %5437 = vmatprep.subr.bf16.mxu1 %v6130_v17  ;;  %3505 = vmatprep.mubr.bf16.mxu0 %v4895_v47  ;;  %v6191_v16 = vld [vmem:[%s8148_s1 + $0x338] sm:$0xff]   ;;  %v6220_v47 = vld [vmem:[%s8148_s1 + $0x4a8] sm:$0xff]  }
  0x47   :  { %3545 = vmatprep.mubr.bf16.mxu1 %v4897_v49  ;;  %v6192_v17 = vld [vmem:[%s8148_s1 + $0x3b8] sm:$0xff]   ;;  %v6222_v49 = vld [vmem:[%s8148_s1 + $0x4f0] sm:$0xff]  }
  0x48   :  { %5416 = vmatpush3.bf16.msra.mxu0 %v6131_v18  ;;  %v55_v18 = vld [vmem:[%s8147_s0 + $0x30] sm:$0xff] }
  0x49   :  { %5438 = vmatpush3.bf16.msra.mxu1 %v6132_v19  ;;  %5417 = vmatprep.subr.bf16.mxu0 %v6133_v20  ;;  %v56_v19 = vld [vmem:[%s8147_s0 + $0x38] sm:$0xff]  ;;  %v4898_v20 = vcombine.low %v55_v18, %v55_v18 }
  0x4a   :  { %5439 = vmatprep.subr.bf16.mxu1 %v6134_v21  ;;  %v4899_v21 = vcombine.high %v55_v18, %v55_v18  ;;  %v6253_v18 = vld [vmem:[%s8148_s1 + $0x568] sm:$0xff]  }
  0x4c   :  { %5418 = vmatpush3.bf16.msra.mxu0 %v6135_v22  ;;  %v4900_v22 = vcombine.low %v56_v19, %v56_v19 }
  0x4d   :  { %5440 = vmatpush3.bf16.msra.mxu1 %v6136_v23  ;;  %5419 = vmatprep.subr.bf16.mxu0 %v6137_v24  ;;  %v6197_v23 = vld [vmem:[%s8148_s1 + $0x440] sm:$0xff]   ;;  %v4901_v24 = vcombine.high %v56_v19, %v56_v19  ;;  %v6254_v19 = vld [vmem:[%s8148_s1 + $0x5e8] sm:$0xff]  }
  0x4e   :  { %5441 = vmatprep.subr.bf16.mxu1 %v6138_v25  ;;  %v6198_v25 = vld [vmem:[%s8148_s1 + $0x4c0] sm:$0xff]  }
  0x50   :  { %5420 = vmatpush3.bf16.msra.mxu0 %v6139_v26  ;;  %v6199_v26 = vld [vmem:[%s8148_s1 + $0x400] sm:$0xff]  }
  0x51   :  { %5442 = vmatpush3.bf16.msra.mxu1 %v6140_v27  ;;  %5421 = vmatprep.subr.bf16.mxu0 %v6141_v28  ;;  %v6200_v27 = vld [vmem:[%s8148_s1 + $0x480] sm:$0xff]   ;;  %v6201_v28 = vld [vmem:[%s8148_s1 + $0x448] sm:$0xff]  }
  0x52   :  { %5443 = vmatprep.subr.bf16.mxu1 %v6142_v29  ;;  %v6202_v29 = vld [vmem:[%s8148_s1 + $0x4c8] sm:$0xff]  }
  0x54   :  { %5422 = vmatpush3.bf16.msra.mxu0 %v6143_v30  ;;  %v6203_v30 = vld [vmem:[%s8148_s1 + $0x408] sm:$0xff]  }
  0x55   :  { %5444 = vmatpush3.bf16.msra.mxu1 %v6144_v31  ;;  %5423 = vmatprep.subr.bf16.mxu0 %v6145_v32  ;;  %v6204_v31 = vld [vmem:[%s8148_s1 + $0x488] sm:$0xff]   ;;  %v6205_v32 = vld [vmem:[%s8148_s1 + $0x450] sm:$0xff]  }
  0x56   :  { %5445 = vmatprep.subr.bf16.mxu1 %v6146_v33  ;;  %v6206_v33 = vld [vmem:[%s8148_s1 + $0x4d0] sm:$0xff]  }
  0x58   :  { %5424 = vmatpush3.bf16.msra.mxu0 %v6147_v34  ;;  %v6207_v34 = vld [vmem:[%s8148_s1 + $0x410] sm:$0xff]  }
  0x59   :  { %5446 = vmatpush3.bf16.msra.mxu1 %v6148_v35  ;;  %5425 = vmatprep.subr.bf16.mxu0 %v6149_v36  ;;  %v6208_v35 = vld [vmem:[%s8148_s1 + $0x490] sm:$0xff]   ;;  %v6209_v36 = vld [vmem:[%s8148_s1 + $0x458] sm:$0xff]  }
  0x5a   :  { %5447 = vmatprep.subr.bf16.mxu1 %v6150_v37  ;;  %v6210_v37 = vld [vmem:[%s8148_s1 + $0x4d8] sm:$0xff]  }
  0x5c   :  { %5426 = vmatpush3.bf16.msra.mxu0 %v6151_v38  ;;  %v6211_v38 = vld [vmem:[%s8148_s1 + $0x418] sm:$0xff]  }
  0x5d   :  { %5448 = vmatpush3.bf16.msra.mxu1 %v6152_v39  ;;  %5427 = vmatprep.subr.bf16.mxu0 %v6153_v40  ;;  %v6212_v39 = vld [vmem:[%s8148_s1 + $0x498] sm:$0xff]   ;;  %v6213_v40 = vld [vmem:[%s8148_s1 + $0x460] sm:$0xff]  }
  0x5e   :  { %5449 = vmatprep.subr.bf16.mxu1 %v6154_v41  ;;  %v6214_v41 = vld [vmem:[%s8148_s1 + $0x4e0] sm:$0xff]  }
  0x60   :  { %5428 = vmatpush3.bf16.msra.mxu0 %v6155_v42  ;;  %v6215_v42 = vld [vmem:[%s8148_s1 + $0x420] sm:$0xff]  }
  0x61   :  { %5450 = vmatpush3.bf16.msra.mxu1 %v6156_v43  ;;  %5457 = vmatprep.subr.bf16.mxu0 %v6161_v50  ;;  %v6216_v43 = vld [vmem:[%s8148_s1 + $0x4a0] sm:$0xff]   ;;  %v6223_v50 = vld [vmem:[%s8148_s1 + $0x430] sm:$0xff]  }
  0x62   :  { %5479 = vmatprep.subr.bf16.mxu1 %v6162_v51  ;;  %v6224_v51 = vld [vmem:[%s8148_s1 + $0x4b0] sm:$0xff]  }
  0x63   :  { %3506 = vmatmul.mubr.bf16.vlgmr.msra.gmra.mrb[8].mxu0 %v4894_v46  ;;  %v6219_v46 = vld [vmem:[%s8148_s1 + $0x428] sm:$0xff]  }
  0x64   :  { %3546 = vmatmul.mubr.bf16.vlgmr.msra.gmra.mrb[8].mxu1 %v4896_v48  ;;  %5458 = vmatpush3.bf16.msra.mxu0 %v6163_v52  ;;  %v6221_v48 = vld [vmem:[%s8148_s1 + $0x470] sm:$0xff]   ;;  %v6225_v52 = vld [vmem:[%s8148_s1 + $0x478] sm:$0xff]  }
  0x65   :  { %5480 = vmatpush3.bf16.msra.mxu1 %v6164_v53  ;;  %5459 = vmatprep.subr.bf16.mxu0 %v6165_v54  ;;  %v6226_v53 = vld [vmem:[%s8148_s1 + $0x4f8] sm:$0xff]  }
  0x66   :  { %5481 = vmatprep.subr.bf16.mxu1 %v6166_v55  ;;  %3585 = vmatprep.mubr.bf16.mxu0 %v4899_v21  ;;  %v6227_v54 = vld [vmem:[%s8148_s1 + $0x438] sm:$0xff]   ;;  %v6256_v21 = vld [vmem:[%s8148_s1 + $0x5a8] sm:$0xff]  }
  0x67   :  { %3625 = vmatprep.mubr.bf16.mxu1 %v4901_v24  ;;  %v6228_v55 = vld [vmem:[%s8148_s1 + $0x4b8] sm:$0xff]   ;;  %v6259_v24 = vld [vmem:[%s8148_s1 + $0x530] sm:$0xff]  }
  0x68   :  { %5460 = vmatpush3.bf16.msra.mxu0 %v6167_v56  ;;  %v57_v56 = vld [vmem:[%s8147_s0 + $0x40] sm:$0xff] }
  0x69   :  { %5482 = vmatpush3.bf16.msra.mxu1 %v6168_v57  ;;  %5461 = vmatprep.subr.bf16.mxu0 %v6169_v58  ;;  %v4902_v57 = vcombine.low %v57_v56, %v57_v56  ;;  %v4903_v58 = vcombine.high %v57_v56, %v57_v56  ;;  %v6289_v56 = vld [vmem:[%s8148_s1 + $0x668] sm:$0xff]  }
  0x6a   :  { %5483 = vmatprep.subr.bf16.mxu1 %v6170_v59  ;;  %v58_v59 = vld [vmem:[%s8147_s0 + $0x48] sm:$0xff] }
  0x6c   :  { %5462 = vmatpush3.bf16.msra.mxu0 %v6171_v60  ;;  %v4904_v60 = vcombine.low %v58_v59, %v58_v59 }
  0x6d   :  { %5484 = vmatpush3.bf16.msra.mxu1 %v6172_v61  ;;  %5463 = vmatprep.subr.bf16.mxu0 %v6173_v62  ;;  %v4905_v61 = vcombine.high %v58_v59, %v58_v59  ;;  %v6233_v62 = vld [vmem:[%s8148_s1 + $0x540] sm:$0xff]   ;;  %v6292_v59 = vld [vmem:[%s8148_s1 + $0x6a8] sm:$0xff]  }
  0x6e   :  { %5485 = vmatprep.subr.bf16.mxu1 %v6174_v63  ;;  %v6234_v63 = vld [vmem:[%s8148_s1 + $0x5c0] sm:$0xff]  }
  0x70   :  { %5464 = vmatpush3.bf16.msra.mxu0 %v6175_v0  ;;  %v6235_v0 = vld [vmem:[%s8148_s1 + $0x500] sm:$0xff]  }
  0x71   :  { %5486 = vmatpush3.bf16.msra.mxu1 %v6176_v1  ;;  %5465 = vmatprep.subr.bf16.mxu0 %v6177_v2  ;;  %v6236_v1 = vld [vmem:[%s8148_s1 + $0x580] sm:$0xff]   ;;  %v6237_v2 = vld [vmem:[%s8148_s1 + $0x548] sm:$0xff]  }
  0x72   :  { %5487 = vmatprep.subr.bf16.mxu1 %v6178_v3  ;;  %v6238_v3 = vld [vmem:[%s8148_s1 + $0x5c8] sm:$0xff]  }
  0x74   :  { %5466 = vmatpush3.bf16.msra.mxu0 %v6179_v4  ;;  %v6239_v4 = vld [vmem:[%s8148_s1 + $0x508] sm:$0xff]  }
  0x75   :  { %5488 = vmatpush3.bf16.msra.mxu1 %v6180_v5  ;;  %5467 = vmatprep.subr.bf16.mxu0 %v6181_v6  ;;  %v6240_v5 = vld [vmem:[%s8148_s1 + $0x588] sm:$0xff]   ;;  %v6241_v6 = vld [vmem:[%s8148_s1 + $0x550] sm:$0xff]  }
  0x76   :  { %5489 = vmatprep.subr.bf16.mxu1 %v6182_v7  ;;  %v6242_v7 = vld [vmem:[%s8148_s1 + $0x5d0] sm:$0xff]  }
  0x78   :  { %5468 = vmatpush3.bf16.msra.mxu0 %v6183_v8  ;;  %v6243_v8 = vld [vmem:[%s8148_s1 + $0x510] sm:$0xff]  }
  0x79   :  { %5490 = vmatpush3.bf16.msra.mxu1 %v6184_v9  ;;  %5469 = vmatprep.subr.bf16.mxu0 %v6185_v10  ;;  %v6244_v9 = vld [vmem:[%s8148_s1 + $0x590] sm:$0xff]   ;;  %v6245_v10 = vld [vmem:[%s8148_s1 + $0x558] sm:$0xff]  }
  0x7a   :  { %5491 = vmatprep.subr.bf16.mxu1 %v6186_v11  ;;  %v6246_v11 = vld [vmem:[%s8148_s1 + $0x5d8] sm:$0xff]  }
  0x7c   :  { %5470 = vmatpush3.bf16.msra.mxu0 %v6187_v12  ;;  %v6247_v12 = vld [vmem:[%s8148_s1 + $0x518] sm:$0xff]  }
  0x7d   :  { %5492 = vmatpush3.bf16.msra.mxu1 %v6188_v13  ;;  %5471 = vmatprep.subr.bf16.mxu0 %v6189_v14  ;;  %v6248_v13 = vld [vmem:[%s8148_s1 + $0x598] sm:$0xff]   ;;  %v6249_v14 = vld [vmem:[%s8148_s1 + $0x560] sm:$0xff]  }
  0x7e   :  { %5493 = vmatprep.subr.bf16.mxu1 %v6190_v15  ;;  %v6250_v15 = vld [vmem:[%s8148_s1 + $0x5e0] sm:$0xff]  }
  0x80   :  { %5472 = vmatpush3.bf16.msra.mxu0 %v6191_v16  ;;  %v6251_v16 = vld [vmem:[%s8148_s1 + $0x520] sm:$0xff]  }
  0x81   :  { %5494 = vmatpush3.bf16.msra.mxu1 %v6192_v17  ;;  %5501 = vmatprep.subr.bf16.mxu0 %v6197_v23  ;;  %v6252_v17 = vld [vmem:[%s8148_s1 + $0x5a0] sm:$0xff]   ;;  %v6258_v23 = vld [vmem:[%s8148_s1 + $0x5f0] sm:$0xff]  }
  0x82   :  { %5523 = vmatprep.subr.bf16.mxu1 %v6198_v25  ;;  %v6260_v25 = vld [vmem:[%s8148_s1 + $0x5b0] sm:$0xff]  }
  0x83   :  { %3586 = vmatmul.mubr.bf16.vlgmr.msra.gmra.mrb[12].mxu0 %v4898_v20  ;;  %v6255_v20 = vld [vmem:[%s8148_s1 + $0x528] sm:$0xff]  }
  0x84   :  { %3626 = vmatmul.mubr.bf16.vlgmr.msra.gmra.mrb[12].mxu1 %v4900_v22  ;;  %5502 = vmatpush3.bf16.msra.mxu0 %v6199_v26  ;;  %v6257_v22 = vld [vmem:[%s8148_s1 + $0x570] sm:$0xff]   ;;  %v6261_v26 = vld [vmem:[%s8148_s1 + $0x578] sm:$0xff]  }
  0x85   :  { %5524 = vmatpush3.bf16.msra.mxu1 %v6200_v27  ;;  %5503 = vmatprep.subr.bf16.mxu0 %v6201_v28  ;;  %v6262_v27 = vld [vmem:[%s8148_s1 + $0x5f8] sm:$0xff]  }
  0x86   :  { %5525 = vmatprep.subr.bf16.mxu1 %v6202_v29  ;;  %3665 = vmatprep.mubr.bf16.mxu0 %v4903_v58  ;;  %v6263_v28 = vld [vmem:[%s8148_s1 + $0x538] sm:$0xff]   ;;  %v6291_v58 = vld [vmem:[%s8148_s1 + $0x628] sm:$0xff]  }
  0x87   :  { %3705 = vmatprep.mubr.bf16.mxu1 %v4905_v61  ;;  %v6264_v29 = vld [vmem:[%s8148_s1 + $0x5b8] sm:$0xff]   ;;  %v6294_v61 = vld [vmem:[%s8148_s1 + $0x6f0] sm:$0xff]  }
  0x88   :  { %5504 = vmatpush3.bf16.msra.mxu0 %v6203_v30  ;;  %v59_v30 = vld [vmem:[%s8147_s0 + $0x50] sm:$0xff] }
  0x89   :  { %5526 = vmatpush3.bf16.msra.mxu1 %v6204_v31  ;;  %5505 = vmatprep.subr.bf16.mxu0 %v6205_v32  ;;  %v60_v31 = vld [vmem:[%s8147_s0 + $0x58] sm:$0xff]  ;;  %v4906_v32 = vcombine.low %v59_v30, %v59_v30 }
  0x8a   :  { %5527 = vmatprep.subr.bf16.mxu1 %v6206_v33  ;;  %v4907_v33 = vcombine.high %v59_v30, %v59_v30  ;;  %v6324_v30 = vld [vmem:[%s8148_s1 + $0x7a0] sm:$0xff]  }
  0x8c   :  { %5506 = vmatpush3.bf16.msra.mxu0 %v6207_v34  ;;  %v4908_v34 = vcombine.low %v60_v31, %v60_v31 }
  0x8d   :  { %5528 = vmatpush3.bf16.msra.mxu1 %v6208_v35  ;;  %5507 = vmatprep.subr.bf16.mxu0 %v6209_v36  ;;  %v4909_v35 = vcombine.high %v60_v31, %v60_v31  ;;  %v6269_v36 = vld [vmem:[%s8148_s1 + $0x640] sm:$0xff]  }
  0x8e   :  { %5529 = vmatprep.subr.bf16.mxu1 %v6210_v37  ;;  %v6270_v37 = vld [vmem:[%s8148_s1 + $0x6c0] sm:$0xff]  }
  0x90   :  { %5508 = vmatpush3.bf16.msra.mxu0 %v6211_v38  ;;  %v6271_v38 = vld [vmem:[%s8148_s1 + $0x600] sm:$0xff]  }
  0x91   :  { %5530 = vmatpush3.bf16.msra.mxu1 %v6212_v39  ;;  %5509 = vmatprep.subr.bf16.mxu0 %v6213_v40  ;;  %v6272_v39 = vld [vmem:[%s8148_s1 + $0x680] sm:$0xff]   ;;  %v6273_v40 = vld [vmem:[%s8148_s1 + $0x648] sm:$0xff]  }
  0x92   :  { %5531 = vmatprep.subr.bf16.mxu1 %v6214_v41  ;;  %v6274_v41 = vld [vmem:[%s8148_s1 + $0x6c8] sm:$0xff]  }
  0x94   :  { %5510 = vmatpush3.bf16.msra.mxu0 %v6215_v42  ;;  %v6275_v42 = vld [vmem:[%s8148_s1 + $0x608] sm:$0xff]  }
  0x95   :  { %5532 = vmatpush3.bf16.msra.mxu1 %v6216_v43  ;;  %5511 = vmatprep.subr.bf16.mxu0 %v6217_v44  ;;  %v6276_v43 = vld [vmem:[%s8148_s1 + $0x688] sm:$0xff]   ;;  %v6277_v44 = vld [vmem:[%s8148_s1 + $0x650] sm:$0xff]  }
  0x96   :  { %5533 = vmatprep.subr.bf16.mxu1 %v6218_v45  ;;  %v6278_v45 = vld [vmem:[%s8148_s1 + $0x6d0] sm:$0xff]  }
  0x98   :  { %5512 = vmatpush3.bf16.msra.mxu0 %v6219_v46  ;;  %v6279_v46 = vld [vmem:[%s8148_s1 + $0x610] sm:$0xff]  }
  0x99   :  { %5534 = vmatpush3.bf16.msra.mxu1 %v6220_v47  ;;  %5513 = vmatprep.subr.bf16.mxu0 %v6221_v48  ;;  %v6280_v47 = vld [vmem:[%s8148_s1 + $0x690] sm:$0xff]   ;;  %v6281_v48 = vld [vmem:[%s8148_s1 + $0x658] sm:$0xff]  }
  0x9a   :  { %5535 = vmatprep.subr.bf16.mxu1 %v6222_v49  ;;  %v6282_v49 = vld [vmem:[%s8148_s1 + $0x6d8] sm:$0xff]  }
  0x9c   :  { %5514 = vmatpush3.bf16.msra.mxu0 %v6223_v50  ;;  %v6283_v50 = vld [vmem:[%s8148_s1 + $0x618] sm:$0xff]  }
  0x9d   :  { %5536 = vmatpush3.bf16.msra.mxu1 %v6224_v51  ;;  %5515 = vmatprep.subr.bf16.mxu0 %v6225_v52  ;;  %v6284_v51 = vld [vmem:[%s8148_s1 + $0x698] sm:$0xff]   ;;  %v6285_v52 = vld [vmem:[%s8148_s1 + $0x660] sm:$0xff]  }
  0x9e   :  { %5537 = vmatprep.subr.bf16.mxu1 %v6226_v53  ;;  %v6286_v53 = vld [vmem:[%s8148_s1 + $0x6e0] sm:$0xff]  }
  0xa0   :  { %5516 = vmatpush3.bf16.msra.mxu0 %v6227_v54  ;;  %v6287_v54 = vld [vmem:[%s8148_s1 + $0x620] sm:$0xff]  }
  0xa1   :  { %5538 = vmatpush3.bf16.msra.mxu1 %v6228_v55  ;;  %5545 = vmatprep.subr.bf16.mxu0 %v6233_v62  ;;  %v6288_v55 = vld [vmem:[%s8148_s1 + $0x6a0] sm:$0xff]   ;;  %v6295_v62 = vld [vmem:[%s8148_s1 + $0x630] sm:$0xff]  }
  0xa2   :  { %5567 = vmatprep.subr.bf16.mxu1 %v6234_v63  ;;  %v6296_v63 = vld [vmem:[%s8148_s1 + $0x6b0] sm:$0xff]  }
  0xa3   :  { %3666 = vmatmul.mubr.bf16.vlgmr.msra.gmra.mrb[16].mxu0 %v4902_v57  ;;  %v6290_v57 = vld [vmem:[%s8148_s1 + $0x6e8] sm:$0xff]  }
  0xa4   :  { %3706 = vmatmul.mubr.bf16.vlgmr.msra.gmra.mrb[16].mxu1 %v4904_v60  ;;  %5546 = vmatpush3.bf16.msra.mxu0 %v6235_v0  ;;  %v6293_v60 = vld [vmem:[%s8148_s1 + $0x670] sm:$0xff]   ;;  %v6297_v0 = vld [vmem:[%s8148_s1 + $0x678] sm:$0xff]  }
  0xa5   :  { %5568 = vmatpush3.bf16.msra.mxu1 %v6236_v1  ;;  %5547 = vmatprep.subr.bf16.mxu0 %v6237_v2  ;;  %v6298_v1 = vld [vmem:[%s8148_s1 + $0x6f8] sm:$0xff]  }
  0xa6   :  { %5569 = vmatprep.subr.bf16.mxu1 %v6238_v3  ;;  %3745 = vmatprep.mubr.bf16.mxu0 %v4907_v33  ;;  %v6299_v2 = vld [vmem:[%s8148_s1 + $0x638] sm:$0xff]   ;;  %v6325_v33 = vld [vmem:[%s8148_s1 + $0x768] sm:$0xff]  }
  0xa7   :  { %3785 = vmatprep.mubr.bf16.mxu1 %v4909_v35  ;;  %v6300_v3 = vld [vmem:[%s8148_s1 + $0x6b8] sm:$0xff]  }
  0xa8   :  { %5548 = vmatpush3.bf16.msra.mxu0 %v6239_v4  ;;  %v61_v4 = vld [vmem:[%s8147_s0 + $0x60] sm:$0xff] }
  0xa9   :  { %5570 = vmatpush3.bf16.msra.mxu1 %v6240_v5  ;;  %5549 = vmatprep.subr.bf16.mxu0 %v6241_v6  ;;  %v62_v5 = vld [vmem:[%s8147_s0 + $0x68] sm:$0xff]  ;;  %v4910_v6 = vcombine.low %v61_v4, %v61_v4 }
  0xaa   :  { %5571 = vmatprep.subr.bf16.mxu1 %v6242_v7  ;;  %v4911_v7 = vcombine.high %v61_v4, %v61_v4  ;;  %v6350_v4 = vld [vmem:[%s8148_s1 + $0x8d0] sm:$0xff]  }
  0xac   :  { %5550 = vmatpush3.bf16.msra.mxu0 %v6243_v8  ;;  %v4912_v8 = vcombine.low %v62_v5, %v62_v5 }
  0xad   :  { %5572 = vmatpush3.bf16.msra.mxu1 %v6244_v9  ;;  %5551 = vmatprep.subr.bf16.mxu0 %v6245_v10  ;;  %v6305_v9 = vld [vmem:[%s8148_s1 + $0x740] sm:$0xff]   ;;  %v4913_v10 = vcombine.high %v62_v5, %v62_v5  ;;  %v6351_v5 = vld [vmem:[%s8148_s1 + $0x810] sm:$0xff]  }
  0xae   :  { %5573 = vmatprep.subr.bf16.mxu1 %v6246_v11  ;;  %v6306_v11 = vld [vmem:[%s8148_s1 + $0x7c0] sm:$0xff]  }
  0xb0   :  { %5552 = vmatpush3.bf16.msra.mxu0 %v6247_v12  ;;  %v6307_v12 = vld [vmem:[%s8148_s1 + $0x700] sm:$0xff]  }
  0xb1   :  { %5574 = vmatpush3.bf16.msra.mxu1 %v6248_v13  ;;  %5553 = vmatprep.subr.bf16.mxu0 %v6249_v14  ;;  %v6308_v13 = vld [vmem:[%s8148_s1 + $0x780] sm:$0xff]   ;;  %v6309_v14 = vld [vmem:[%s8148_s1 + $0x748] sm:$0xff]  }
  0xb2   :  { %5575 = vmatprep.subr.bf16.mxu1 %v6250_v15  ;;  %v6310_v15 = vld [vmem:[%s8148_s1 + $0x7c8] sm:$0xff]  }
  0xb4   :  { %5554 = vmatpush3.bf16.msra.mxu0 %v6251_v16  ;;  %v6311_v16 = vld [vmem:[%s8148_s1 + $0x708] sm:$0xff]  }
  0xb5   :  { %5576 = vmatpush3.bf16.msra.mxu1 %v6252_v17  ;;  %5555 = vmatprep.subr.bf16.mxu0 %v6253_v18  ;;  %v6312_v17 = vld [vmem:[%s8148_s1 + $0x788] sm:$0xff]   ;;  %v6313_v18 = vld [vmem:[%s8148_s1 + $0x750] sm:$0xff]  }
  0xb6   :  { %5577 = vmatprep.subr.bf16.mxu1 %v6254_v19  ;;  %v6314_v19 = vld [vmem:[%s8148_s1 + $0x7d0] sm:$0xff]  }
  0xb8   :  { %5556 = vmatpush3.bf16.msra.mxu0 %v6255_v20  ;;  %v6315_v20 = vld [vmem:[%s8148_s1 + $0x710] sm:$0xff]  }
  0xb9   :  { %5578 = vmatpush3.bf16.msra.mxu1 %v6256_v21  ;;  %5557 = vmatprep.subr.bf16.mxu0 %v6257_v22  ;;  %v6316_v21 = vld [vmem:[%s8148_s1 + $0x790] sm:$0xff]   ;;  %v6317_v22 = vld [vmem:[%s8148_s1 + $0x758] sm:$0xff]  }
  0xba   :  { %5579 = vmatprep.subr.bf16.mxu1 %v6258_v23  ;;  %v6318_v23 = vld [vmem:[%s8148_s1 + $0x7d8] sm:$0xff]  }
  0xbc   :  { %5558 = vmatpush3.bf16.msra.mxu0 %v6259_v24  ;;  %v6319_v24 = vld [vmem:[%s8148_s1 + $0x718] sm:$0xff]  }
  0xbd   :  { %5580 = vmatpush3.bf16.msra.mxu1 %v6260_v25  ;;  %5559 = vmatprep.subr.bf16.mxu0 %v6261_v26  ;;  %v6320_v25 = vld [vmem:[%s8148_s1 + $0x798] sm:$0xff]   ;;  %v6321_v26 = vld [vmem:[%s8148_s1 + $0x760] sm:$0xff]  }
  0xbe   :  { %5581 = vmatprep.subr.bf16.mxu1 %v6262_v27  ;;  %v6322_v27 = vld [vmem:[%s8148_s1 + $0x7e0] sm:$0xff]  }
  0xc0   :  { %5560 = vmatpush3.bf16.msra.mxu0 %v6263_v28  ;;  %v6323_v28 = vld [vmem:[%s8148_s1 + $0x720] sm:$0xff]  }
  0xc1   :  { %5582 = vmatpush3.bf16.msra.mxu1 %v6264_v29  ;;  %5589 = vmatprep.subr.bf16.mxu0 %v6269_v36  ;;  %v6326_v36 = vld [vmem:[%s8148_s1 + $0x7e8] sm:$0xff]  }
  0xc2   :  { %5611 = vmatprep.subr.bf16.mxu1 %v6270_v37 }
  0xc3   :  { %3746 = vmatmul.mubr.bf16.vlgmr.msra.gmra.mrb[20].mxu0 %v4906_v32 }
  0xc4   :  { %3786 = vmatmul.mubr.bf16.vlgmr.msra.gmra.mrb[20].mxu1 %v4908_v34  ;;  %5590 = vmatpush3.bf16.msra.mxu0 %v6271_v38 }
  0xc5   :  { %5612 = vmatpush3.bf16.msra.mxu1 %v6272_v39  ;;  %5591 = vmatprep.subr.bf16.mxu0 %v6273_v40  ;;  %v6327_v40 = vld [vmem:[%s8148_s1 + $0x728] sm:$0xff]  }
  0xc6   :  { %5613 = vmatprep.subr.bf16.mxu1 %v6274_v41  ;;  %3825 = vmatprep.mubr.bf16.mxu0 %v4911_v7  ;;  %v6353_v7 = vld [vmem:[%s8148_s1 + $0x858] sm:$0xff]  }
  0xc7   :  { %3865 = vmatprep.mubr.bf16.mxu1 %v4913_v10  ;;  %v6356_v10 = vld [vmem:[%s8148_s1 + $0x898] sm:$0xff]  }
  0xc8   :  { %5592 = vmatpush3.bf16.msra.mxu0 %v6275_v42 }
  0xc9   :  { %5614 = vmatpush3.bf16.msra.mxu1 %v6276_v43  ;;  %5593 = vmatprep.subr.bf16.mxu0 %v6277_v44  ;;  %v6328_v43 = vld [vmem:[%s8148_s1 + $0x7a8] sm:$0xff]  }
  0xca   :  { %5615 = vmatprep.subr.bf16.mxu1 %v6278_v45  ;;  %v6329_v45 = vld [vmem:[%s8148_s1 + $0x770] sm:$0xff]  }
  0xcc   :  { %5594 = vmatpush3.bf16.msra.mxu0 %v6279_v46  ;;  %v6330_v46 = vld [vmem:[%s8148_s1 + $0x7f0] sm:$0xff]  }
  0xcd   :  { %5616 = vmatpush3.bf16.msra.mxu1 %v6280_v47  ;;  %5595 = vmatprep.subr.bf16.mxu0 %v6281_v48  ;;  %v6331_v47 = vld [vmem:[%s8148_s1 + $0x730] sm:$0xff]  }
  0xce   :  { %5617 = vmatprep.subr.bf16.mxu1 %v6282_v49  ;;  %v6332_v48 = vld [vmem:[%s8148_s1 + $0x7b0] sm:$0xff]   ;;  %v6333_v49 = vld [vmem:[%s8148_s1 + $0x778] sm:$0xff]  }
  0xd0   :  { %5596 = vmatpush3.bf16.msra.mxu0 %v6283_v50  ;;  %v6334_v50 = vld [vmem:[%s8148_s1 + $0x7f8] sm:$0xff]  }
  0xd1   :  { %5618 = vmatpush3.bf16.msra.mxu1 %v6284_v51  ;;  %5597 = vmatprep.subr.bf16.mxu0 %v6285_v52  ;;  %v6335_v51 = vld [vmem:[%s8148_s1 + $0x738] sm:$0xff]  }
  0xd2   :  { %5619 = vmatprep.subr.bf16.mxu1 %v6286_v53  ;;  %v6336_v52 = vld [vmem:[%s8148_s1 + $0x7b8] sm:$0xff]   ;;  %v63_v53 = vld [vmem:[%s8147_s0 + $0x70] sm:$0xff] }
  0xd4   :  { %5598 = vmatpush3.bf16.msra.mxu0 %v6287_v54  ;;  %v64_v54 = vld [vmem:[%s8147_s0 + $0x78] sm:$0xff] }
  0xd5   :  { %5620 = vmatpush3.bf16.msra.mxu1 %v6288_v55  ;;  %5599 = vmatprep.subr.bf16.mxu0 %v6289_v56  ;;  %v4914_v55 = vcombine.low %v63_v53, %v63_v53  ;;  %v4915_v56 = vcombine.high %v63_v53, %v63_v53  ;;  %v6385_v53 = vld [vmem:[%s8148_s1 + $0x950] sm:$0xff]  }
  0xd6   :  { %5621 = vmatprep.subr.bf16.mxu1 %v6290_v57  ;;  %v4916_v57 = vcombine.low %v64_v54, %v64_v54 }
  0xd8   :  { %5600 = vmatpush3.bf16.msra.mxu0 %v6291_v58  ;;  %v6341_v58 = vld [vmem:[%s8148_s1 + $0x840] sm:$0xff]  }
  0xd9   :  { %5622 = vmatpush3.bf16.msra.mxu1 %v6292_v59  ;;  %5601 = vmatprep.subr.bf16.mxu0 %v6293_v60  ;;  %v4917_v59 = vcombine.high %v64_v54, %v64_v54  ;;  %v6342_v60 = vld [vmem:[%s8148_s1 + $0x8c0] sm:$0xff]   ;;  %v6386_v54 = vld [vmem:[%s8148_s1 + $0x9d0] sm:$0xff]  }
  0xda   :  { %5623 = vmatprep.subr.bf16.mxu1 %v6294_v61  ;;  %v6343_v61 = vld [vmem:[%s8148_s1 + $0x800] sm:$0xff]  }
  0xdc   :  { %5602 = vmatpush3.bf16.msra.mxu0 %v6295_v62  ;;  %v6344_v62 = vld [vmem:[%s8148_s1 + $0x880] sm:$0xff]  }
  0xdd   :  { %5624 = vmatpush3.bf16.msra.mxu1 %v6296_v63  ;;  %5603 = vmatprep.subr.bf16.mxu0 %v6297_v0  ;;  %v6345_v63 = vld [vmem:[%s8148_s1 + $0x848] sm:$0xff]  }
  0xde   :  { %5625 = vmatprep.subr.bf16.mxu1 %v6298_v1  ;;  %v6346_v0 = vld [vmem:[%s8148_s1 + $0x8c8] sm:$0xff]  }
  0xdf   :  { %v6347_v1 = vld [vmem:[%s8148_s1 + $0x808] sm:$0xff]  }
  0xe0   :  { %5604 = vmatpush3.bf16.msra.mxu0 %v6299_v2  ;;  %v6348_v2 = vld [vmem:[%s8148_s1 + $0x888] sm:$0xff]  }
  0xe1   :  { %5626 = vmatpush3.bf16.msra.mxu1 %v6300_v3  ;;  %5633 = vmatprep.subr.bf16.mxu0 %v6305_v9  ;;  %v6349_v3 = vld [vmem:[%s8148_s1 + $0x850] sm:$0xff]   ;;  %v6355_v9 = vld [vmem:[%s8148_s1 + $0x818] sm:$0xff]  }
  0xe2   :  { %5655 = vmatprep.subr.bf16.mxu1 %v6306_v11  ;;  %v6357_v11 = vld [vmem:[%s8148_s1 + $0x860] sm:$0xff]  }
  0xe3   :  { %3826 = vmatmul.mubr.bf16.vlgmr.msra.gmra.mrb[24].mxu0 %v4910_v6  ;;  %v6352_v6 = vld [vmem:[%s8148_s1 + $0x890] sm:$0xff]  }
  0xe4   :  { %3866 = vmatmul.mubr.bf16.vlgmr.msra.gmra.mrb[24].mxu1 %v4912_v8  ;;  %5634 = vmatpush3.bf16.msra.mxu0 %v6307_v12  ;;  %v6354_v8 = vld [vmem:[%s8148_s1 + $0x8d8] sm:$0xff]   ;;  %v6358_v12 = vld [vmem:[%s8148_s1 + $0x8e0] sm:$0xff]  }
  0xe5   :  { %5656 = vmatpush3.bf16.msra.mxu1 %v6308_v13  ;;  %5635 = vmatprep.subr.bf16.mxu0 %v6309_v14  ;;  %v6359_v13 = vld [vmem:[%s8148_s1 + $0x820] sm:$0xff]  }
  0xe6   :  { %5657 = vmatprep.subr.bf16.mxu1 %v6310_v15  ;;  %3905 = vmatprep.mubr.bf16.mxu0 %v4915_v56  ;;  %v6360_v15 = vld [vmem:[%s8148_s1 + $0x8a0] sm:$0xff]   ;;  %v6388_v56 = vld [vmem:[%s8148_s1 + $0x990] sm:$0xff]  }
  0xe7   :  { %3945 = vmatprep.mubr.bf16.mxu1 %v4917_v59  ;;  %v6391_v59 = vld [vmem:[%s8148_s1 + $0x918] sm:$0xff]  }
  0xe8   :  { %5636 = vmatpush3.bf16.msra.mxu0 %v6311_v16 }
  0xe9   :  { %5658 = vmatpush3.bf16.msra.mxu1 %v6312_v17  ;;  %5637 = vmatprep.subr.bf16.mxu0 %v6313_v18  ;;  %v6361_v18 = vld [vmem:[%s8148_s1 + $0x868] sm:$0xff]  }
  0xea   :  { %5659 = vmatprep.subr.bf16.mxu1 %v6314_v19 }
  0xec   :  { %5638 = vmatpush3.bf16.msra.mxu0 %v6315_v20 }
  0xed   :  { %5660 = vmatpush3.bf16.msra.mxu1 %v6316_v21  ;;  %5639 = vmatprep.subr.bf16.mxu0 %v6317_v22  ;;  %v6362_v21 = vld [vmem:[%s8148_s1 + $0x8e8] sm:$0xff]  }
  0xee   :  { %5661 = vmatprep.subr.bf16.mxu1 %v6318_v23 }
  0xf0   :  { %5640 = vmatpush3.bf16.msra.mxu0 %v6319_v24 }
  0xf1   :  { %5662 = vmatpush3.bf16.msra.mxu1 %v6320_v25  ;;  %5641 = vmatprep.subr.bf16.mxu0 %v6321_v26  ;;  %v6363_v26 = vld [vmem:[%s8148_s1 + $0x828] sm:$0xff]  }
  0xf2   :  { %5663 = vmatprep.subr.bf16.mxu1 %v6322_v27 }
  0xf4   :  { %5642 = vmatpush3.bf16.msra.mxu0 %v6323_v28  ;;  %v6364_v28 = vld [vmem:[%s8148_s1 + $0x8a8] sm:$0xff]  }
  0xf5   :  { %5664 = vmatpush3.bf16.msra.mxu1 %v6324_v30  ;;  %5643 = vmatprep.subr.bf16.mxu0 %v6325_v33  ;;  %v6367_v33 = vld [vmem:[%s8148_s1 + $0x830] sm:$0xff]  }
  0xf6   :  { %v5341_v29 = vpop.f32.mrb[0].mxu0  ;;  %5665 = vmatprep.subr.bf16.mxu1 %v6326_v36  ;;  %v6370_v36 = vld [vmem:[%s8148_s1 + $0x8f8] sm:$0xff]  }
  0xf7   :  { %v5363_v31 = vpop.f32.mrb[0].mxu1  ;;  %v5342_v32 = vpop.f32.mrb[1].mxu0 }
  0xf8   :  { %v5343_v34 = vadd.f32 %v5342_v32, %v5341_v29  ;;  %v5364_v35 = vpop.f32.mrb[1].mxu1  ;;  %v5344_v38 = vpop.f32.mrb[2].mxu0  ;;  %5644 = vmatpush3.bf16.msra.mxu0 %v6327_v40  ;;  %v6366_v32 = vld [vmem:[%s8148_s1 + $0x8f0] sm:$0xff]   ;;  %v66_v40 = vld [vmem:[%s8147_s0 + $0x88] sm:$0xff] }
  0xf9   :  { %v5365_v37 = vadd.f32 %v5364_v35, %v5363_v31  ;;  %v5366_v39 = vpop.f32.mrb[2].mxu1  ;;  %v5345_v41 = vpop.f32.mrb[3].mxu0  ;;  %5666 = vmatpush3.bf16.msra.mxu1 %v6328_v43  ;;  %5645 = vmatprep.subr.bf16.mxu0 %v6329_v45  ;;  %v6365_v31 = vld [vmem:[%s8148_s1 + $0x870] sm:$0xff]   ;;  %v6369_v35 = vld [vmem:[%s8148_s1 + $0x878] sm:$0xff]   ;;  %v4920_v43 = vcombine.low %v66_v40, %v66_v40  ;;  %v4921_v45 = vcombine.high %v66_v40, %v66_v40 }
  0xfa   :  { %v5367_v44 = vpop.f32.mrb[3].mxu1  ;;  %5667 = vmatprep.subr.bf16.mxu1 %v6330_v46  ;;  %v6372_v38 = vld [vmem:[%s8148_s1 + $0x8b8] sm:$0xff]   ;;  %v65_v39 = vld [vmem:[%s8147_s0 + $0x80] sm:$0xff]  ;;  %v6422_v40 = vld [vmem:[%s8148_s1 + $0xad0] sm:$0xff]  }
  0xfb   :  { %v7379_v42 = vadd.f32 %v5365_v37, %v5343_v34  ;;  %v6368_v34 = vld [vmem:[%s8148_s1 + $0x8b0] sm:$0xff]   ;;  %v6371_v37 = vld [vmem:[%s8148_s1 + $0x838] sm:$0xff]   ;;  %v4918_v41 = vcombine.low %v65_v39, %v65_v39  ;;  %v6377_v44 = vld [vmem:[%s8148_s1 + $0x940] sm:$0xff]  }
  0xfc   :  { %5646 = vmatpush3.bf16.msra.mxu0 %v6331_v47  ;;  %v6378_v46 = vld [vmem:[%s8148_s1 + $0x9c0] sm:$0xff]  }
  0xfd   :  { %5668 = vmatpush3.bf16.msra.mxu1 %v6332_v48  ;;  %5647 = vmatprep.subr.bf16.mxu0 %v6333_v49  ;;  %v6379_v47 = vld [vmem:[%s8148_s1 + $0x900] sm:$0xff]   ;;  %v6381_v49 = vld [vmem:[%s8148_s1 + $0x948] sm:$0xff]  }
  0xfe   :  { %5669 = vmatprep.subr.bf16.mxu1 %v6334_v50  ;;  %v6380_v48 = vld [vmem:[%s8148_s1 + $0x980] sm:$0xff]   ;;  %v6382_v50 = vld [vmem:[%s8148_s1 + $0x9c8] sm:$0xff]  }
 0x100   :  { %5648 = vmatpush3.bf16.msra.mxu0 %v6335_v51  ;;  %v6383_v51 = vld [vmem:[%s8148_s1 + $0x908] sm:$0xff]  }
 0x101   :  { %5670 = vmatpush3.bf16.msra.mxu1 %v6336_v52  ;;  %5677 = vmatprep.subr.bf16.mxu0 %v6341_v58  ;;  %v6384_v52 = vld [vmem:[%s8148_s1 + $0x988] sm:$0xff]   ;;  %v6390_v58 = vld [vmem:[%s8148_s1 + $0x9d8] sm:$0xff]  }
 0x102   :  { %5699 = vmatprep.subr.bf16.mxu1 %v6342_v60  ;;  %v6392_v60 = vld [vmem:[%s8148_s1 + $0x998] sm:$0xff]  }
 0x103   :  { %3906 = vmatmul.mubr.bf16.vlgmr.msra.gmra.mrb[28].mxu0 %v4914_v55  ;;  %v6387_v55 = vld [vmem:[%s8148_s1 + $0x910] sm:$0xff]  }
 0x104   :  { %3946 = vmatmul.mubr.bf16.vlgmr.msra.gmra.mrb[28].mxu1 %v4916_v57  ;;  %5678 = vmatpush3.bf16.msra.mxu0 %v6343_v61  ;;  %v6389_v57 = vld [vmem:[%s8148_s1 + $0x958] sm:$0xff]   ;;  %v6393_v61 = vld [vmem:[%s8148_s1 + $0x960] sm:$0xff]  }
 0x105   :  { %5700 = vmatpush3.bf16.msra.mxu1 %v6344_v62  ;;  %5679 = vmatprep.subr.bf16.mxu0 %v6345_v63  ;;  %v6394_v62 = vld [vmem:[%s8148_s1 + $0x9e0] sm:$0xff]  }
 0x106   :  { %5701 = vmatprep.subr.bf16.mxu1 %v6346_v0  ;;  %4025 = vmatprep.mubr.bf16.mxu1 %v4921_v45  ;;  %v6395_v0 = vld [vmem:[%s8148_s1 + $0x920] sm:$0xff]   ;;  %v6427_v45 = vld [vmem:[%s8148_s1 + $0xa18] sm:$0xff]  }
 0x108   :  { %5680 = vmatpush3.bf16.msra.mxu0 %v6347_v1 }
 0x109   :  { %5702 = vmatpush3.bf16.msra.mxu1 %v6348_v2  ;;  %5681 = vmatprep.subr.bf16.mxu0 %v6349_v3  ;;  %v6396_v2 = vld [vmem:[%s8148_s1 + $0x9a0] sm:$0xff]  }
 0x10a   :  { %5703 = vmatprep.subr.bf16.mxu1 %v6350_v4 }
 0x10c   :  { %5682 = vmatpush3.bf16.msra.mxu0 %v6351_v5  ;;  %v6397_v5 = vld [vmem:[%s8148_s1 + $0x968] sm:$0xff]  }
 0x10d   :  { %5704 = vmatpush3.bf16.msra.mxu1 %v6352_v6  ;;  %5683 = vmatprep.subr.bf16.mxu0 %v6353_v7 }
 0x10e   :  { %5705 = vmatprep.subr.bf16.mxu1 %v6354_v8  ;;  %v6398_v8 = vld [vmem:[%s8148_s1 + $0x9e8] sm:$0xff]  }
 0x110   :  { %5684 = vmatpush3.bf16.msra.mxu0 %v6355_v9 }
 0x111   :  { %5706 = vmatpush3.bf16.msra.mxu1 %v6356_v10  ;;  %5685 = vmatprep.subr.bf16.mxu0 %v6357_v11  ;;  %v6399_v11 = vld [vmem:[%s8148_s1 + $0x928] sm:$0xff]  }
 0x112   :  { %5707 = vmatprep.subr.bf16.mxu1 %v6358_v12 }
 0x114   :  { %5686 = vmatpush3.bf16.msra.mxu0 %v6359_v13  ;;  %v6400_v13 = vld [vmem:[%s8148_s1 + $0x9a8] sm:$0xff]  }
 0x115   :  { %5708 = vmatpush3.bf16.msra.mxu1 %v6360_v15  ;;  %5687 = vmatprep.subr.bf16.mxu0 %v6361_v18  ;;  %v6402_v18 = vld [vmem:[%s8148_s1 + $0x9f0] sm:$0xff]  }
 0x116   :  { %v5385_v14 = vpop.f32.mrb[4].mxu0  ;;  %5709 = vmatprep.subr.bf16.mxu1 %v6362_v21  ;;  %v6405_v21 = vld [vmem:[%s8148_s1 + $0x978] sm:$0xff]  }
 0x117   :  { %v5407_v16 = vpop.f32.mrb[4].mxu1  ;;  %v5386_v17 = vpop.f32.mrb[5].mxu0 }
 0x118   :  { %v5387_v19 = vadd.f32 %v5386_v17, %v5385_v14  ;;  %v5408_v20 = vpop.f32.mrb[5].mxu1  ;;  %v5388_v23 = vpop.f32.mrb[6].mxu0  ;;  %5688 = vmatpush3.bf16.msra.mxu0 %v6363_v26 }
 0x119   :  { %v5409_v22 = vadd.f32 %v5408_v20, %v5407_v16  ;;  %v5410_v24 = vpop.f32.mrb[6].mxu1  ;;  %v5389_v27 = vpop.f32.mrb[7].mxu0  ;;  %5710 = vmatpush3.bf16.msra.mxu1 %v6364_v28  ;;  %5689 = vmatprep.subr.bf16.mxu0 %v6365_v31  ;;  %v6401_v16 = vld [vmem:[%s8148_s1 + $0x970] sm:$0xff]   ;;  %v6407_v23 = vld [vmem:[%s8148_s1 + $0x938] sm:$0xff]   ;;  %v6413_v31 = vld [vmem:[%s8148_s1 + $0xa40] sm:$0xff]  }
 0x11a   :  { %v3428_v25 = vadd.f32 %v5387_v19, %v7379_v42  ;;  %v5411_v29 = vpop.f32.mrb[7].mxu1  ;;  %5711 = vmatprep.subr.bf16.mxu1 %v6366_v32  ;;  %v4919_v42 = vcombine.high %v65_v39, %v65_v39  ;;  %v6403_v19 = vld [vmem:[%s8148_s1 + $0x930] sm:$0xff]   ;;  %v6408_v24 = vld [vmem:[%s8148_s1 + $0x9b8] sm:$0xff]   ;;  %v6414_v32 = vld [vmem:[%s8148_s1 + $0xac0] sm:$0xff]  }
 0x11b   :  { %v6404_v20 = vld [vmem:[%s8148_s1 + $0x9b0] sm:$0xff]   ;;  %v68_v28 = vld [vmem:[%s8147_s0 + $0x98] sm:$0xff] }
 0x11c   :  { %v7487_v30 = vadd.f32 %v5409_v22, %v3428_v25  ;;  %5690 = vmatpush3.bf16.msra.mxu0 %v6367_v33  ;;  %3985 = vmatprep.mubr.bf16.mxu0 %v4919_v42  ;;  %v6406_v22 = vld [vmem:[%s8148_s1 + $0x9f8] sm:$0xff]   ;;  %v67_v25 = vld [vmem:[%s8147_s0 + $0x90] sm:$0xff]  ;;  %v4924_v29 = vcombine.low %v68_v28, %v68_v28  ;;  %v6415_v33 = vld [vmem:[%s8148_s1 + $0xa00] sm:$0xff]  }
 0x11d   :  { %5712 = vmatpush3.bf16.msra.mxu1 %v6368_v34  ;;  %5691 = vmatprep.subr.bf16.mxu0 %v6369_v35  ;;  %v4922_v26 = vcombine.low %v67_v25, %v67_v25  ;;  %v4923_v27 = vcombine.high %v67_v25, %v67_v25  ;;  %v6416_v34 = vld [vmem:[%s8148_s1 + $0xa80] sm:$0xff]   ;;  %v6417_v35 = vld [vmem:[%s8148_s1 + $0xa48] sm:$0xff]   ;;  %v6421_v39 = vld [vmem:[%s8148_s1 + $0xa50] sm:$0xff]  }
 0x11e   :  { %5713 = vmatprep.subr.bf16.mxu1 %v6370_v36  ;;  %v6418_v36 = vld [vmem:[%s8148_s1 + $0xac8] sm:$0xff]   ;;  %v6424_v42 = vld [vmem:[%s8148_s1 + $0xa90] sm:$0xff]  }
 0x11f   :  { %v6457_v25 = vld [vmem:[%s8148_s1 + $0xb50] sm:$0xff]  }
 0x120   :  { %5692 = vmatpush3.bf16.msra.mxu0 %v6371_v37  ;;  %v6419_v37 = vld [vmem:[%s8148_s1 + $0xa08] sm:$0xff]  }
 0x121   :  { %5714 = vmatpush3.bf16.msra.mxu1 %v6372_v38  ;;  %5721 = vmatprep.subr.bf16.mxu0 %v6377_v44  ;;  %v6420_v38 = vld [vmem:[%s8148_s1 + $0xa88] sm:$0xff]   ;;  %v6426_v44 = vld [vmem:[%s8148_s1 + $0xad8] sm:$0xff]  }
 0x122   :  { %5743 = vmatprep.subr.bf16.mxu1 %v6378_v46  ;;  %v6428_v46 = vld [vmem:[%s8148_s1 + $0xa98] sm:$0xff]  }
 0x123   :  { %3986 = vmatmul.mubr.bf16.vlgmr.msra.gmra.mrb[32].mxu0 %v4918_v41  ;;  %v6423_v41 = vld [vmem:[%s8148_s1 + $0xa10] sm:$0xff]  }
 0x124   :  { %4026 = vmatmul.mubr.bf16.vlgmr.msra.gmra.mrb[32].mxu1 %v4920_v43  ;;  %5722 = vmatpush3.bf16.msra.mxu0 %v6379_v47  ;;  %v6425_v43 = vld [vmem:[%s8148_s1 + $0xa58] sm:$0xff]   ;;  %v6429_v47 = vld [vmem:[%s8148_s1 + $0xa60] sm:$0xff]  }
 0x125   :  { %5744 = vmatpush3.bf16.msra.mxu1 %v6380_v48  ;;  %5723 = vmatprep.subr.bf16.mxu0 %v6381_v49  ;;  %v6430_v48 = vld [vmem:[%s8148_s1 + $0xae0] sm:$0xff]  }
 0x126   :  { %5745 = vmatprep.subr.bf16.mxu1 %v6382_v50  ;;  %4065 = vmatprep.mubr.bf16.mxu0 %v4923_v27  ;;  %v6431_v50 = vld [vmem:[%s8148_s1 + $0xa20] sm:$0xff]   ;;  %v6459_v27 = vld [vmem:[%s8148_s1 + $0xb10] sm:$0xff]  }
 0x128   :  { %5724 = vmatpush3.bf16.msra.mxu0 %v6383_v51 }
 0x129   :  { %5746 = vmatpush3.bf16.msra.mxu1 %v6384_v52  ;;  %5725 = vmatprep.subr.bf16.mxu0 %v6385_v53  ;;  %v6432_v52 = vld [vmem:[%s8148_s1 + $0xaa0] sm:$0xff]  }
 0x12a   :  { %5747 = vmatprep.subr.bf16.mxu1 %v6386_v54 }
 0x12c   :  { %5726 = vmatpush3.bf16.msra.mxu0 %v6387_v55  ;;  %v6433_v55 = vld [vmem:[%s8148_s1 + $0xa68] sm:$0xff]  }
 0x12d   :  { %5748 = vmatpush3.bf16.msra.mxu1 %v6388_v56  ;;  %5727 = vmatprep.subr.bf16.mxu0 %v6389_v57 }
 0x12e   :  { %5749 = vmatprep.subr.bf16.mxu1 %v6390_v58  ;;  %v6434_v58 = vld [vmem:[%s8148_s1 + $0xae8] sm:$0xff]  }
 0x130   :  { %5728 = vmatpush3.bf16.msra.mxu0 %v6391_v59 }
 0x131   :  { %5750 = vmatpush3.bf16.msra.mxu1 %v6392_v60  ;;  %5729 = vmatprep.subr.bf16.mxu0 %v6393_v61  ;;  %v6435_v61 = vld [vmem:[%s8148_s1 + $0xa28] sm:$0xff]  }
 0x132   :  { %5751 = vmatprep.subr.bf16.mxu1 %v6394_v62 }
 0x134   :  { %5730 = vmatpush3.bf16.msra.mxu0 %v6395_v0 }
 0x135   :  { %5752 = vmatpush3.bf16.msra.mxu1 %v6396_v2  ;;  %5731 = vmatprep.subr.bf16.mxu0 %v6397_v5  ;;  %v6437_v2 = vld [vmem:[%s8148_s1 + $0xa70] sm:$0xff]  }
 0x136   :  { %v5429_v63 = vpop.f32.mrb[8].mxu0  ;;  %5753 = vmatprep.subr.bf16.mxu1 %v6398_v8  ;;  %v6439_v5 = vld [vmem:[%s8148_s1 + $0xa30] sm:$0xff]   ;;  %v6442_v8 = vld [vmem:[%s8148_s1 + $0xaf8] sm:$0xff]  }
 0x137   :  { %v5451_v1 = vpop.f32.mrb[8].mxu1  ;;  %v5430_v3 = vpop.f32.mrb[9].mxu0 }
 0x138   :  { %v5452_v4 = vpop.f32.mrb[9].mxu1  ;;  %v5431_v6 = vadd.f32 %v5430_v3, %v5429_v63  ;;  %v5432_v9 = vpop.f32.mrb[10].mxu0  ;;  %5732 = vmatpush3.bf16.msra.mxu0 %v6399_v11  ;;  %v6436_v63 = vld [vmem:[%s8148_s1 + $0xaa8] sm:$0xff]   ;;  %v69_v11 = vld [vmem:[%s8147_s0 + $0xa0] sm:$0xff] }
 0x139   :  { %v5453_v7 = vadd.f32 %v5452_v4, %v5451_v1  ;;  %v5454_v10 = vpop.f32.mrb[10].mxu1  ;;  %v5433_v14 = vpop.f32.mrb[11].mxu0  ;;  %5754 = vmatpush3.bf16.msra.mxu1 %v6400_v13  ;;  %5733 = vmatprep.subr.bf16.mxu0 %v6401_v16  ;;  %v6438_v4 = vld [vmem:[%s8148_s1 + $0xaf0] sm:$0xff]   ;;  %v6443_v9 = vld [vmem:[%s8148_s1 + $0xa38] sm:$0xff]   ;;  %v4926_v13 = vcombine.low %v69_v11, %v69_v11 }
 0x13a   :  { %v3508_v12 = vadd.f32 %v5431_v6, %v7487_v30  ;;  %v5455_v15 = vpop.f32.mrb[11].mxu1  ;;  %5755 = vmatprep.subr.bf16.mxu1 %v6402_v18  ;;  %v4925_v30 = vcombine.high %v68_v28, %v68_v28  ;;  %v6440_v6 = vld [vmem:[%s8148_s1 + $0xab0] sm:$0xff]   ;;  %v6444_v10 = vld [vmem:[%s8148_s1 + $0xab8] sm:$0xff]   ;;  %v4927_v14 = vcombine.high %v69_v11, %v69_v11  ;;  %v6450_v18 = vld [vmem:[%s8148_s1 + $0xbc0] sm:$0xff]  }
 0x13b   :  { %v6460_v28 = vld [vmem:[%s8148_s1 + $0xb90] sm:$0xff]  }
 0x13c   :  { %v7595_v17 = vadd.f32 %v5453_v7, %v3508_v12  ;;  %5734 = vmatpush3.bf16.msra.mxu0 %v6403_v19  ;;  %4105 = vmatprep.mubr.bf16.mxu1 %v4925_v30  ;;  %v6441_v7 = vld [vmem:[%s8148_s1 + $0xa78] sm:$0xff]   ;;  %v70_v12 = vld [vmem:[%s8147_s0 + $0xa8] sm:$0xff]  ;;  %v6451_v19 = vld [vmem:[%s8148_s1 + $0xb00] sm:$0xff]  }
 0x13d   :  { %5756 = vmatpush3.bf16.msra.mxu1 %v6404_v20  ;;  %5735 = vmatprep.subr.bf16.mxu0 %v6405_v21  ;;  %v4928_v15 = vcombine.low %v70_v12, %v70_v12  ;;  %v4929_v16 = vcombine.high %v70_v12, %v70_v12  ;;  %v6452_v20 = vld [vmem:[%s8148_s1 + $0xb80] sm:$0xff]   ;;  %v6453_v21 = vld [vmem:[%s8148_s1 + $0xb48] sm:$0xff]   ;;  %v6462_v30 = vld [vmem:[%s8148_s1 + $0xbd8] sm:$0xff]  }
 0x13e   :  { %5757 = vmatprep.subr.bf16.mxu1 %v6406_v22  ;;  %v6454_v22 = vld [vmem:[%s8148_s1 + $0xbc8] sm:$0xff]  }
 0x140   :  { %5736 = vmatpush3.bf16.msra.mxu0 %v6407_v23  ;;  %v6455_v23 = vld [vmem:[%s8148_s1 + $0xb08] sm:$0xff]  }
 0x141   :  { %5758 = vmatpush3.bf16.msra.mxu1 %v6408_v24  ;;  %5765 = vmatprep.subr.bf16.mxu0 %v6413_v31  ;;  %v6456_v24 = vld [vmem:[%s8148_s1 + $0xb88] sm:$0xff]   ;;  %v6463_v31 = vld [vmem:[%s8148_s1 + $0xb18] sm:$0xff]  }
 0x142   :  { %5787 = vmatprep.subr.bf16.mxu1 %v6414_v32  ;;  %v6464_v32 = vld [vmem:[%s8148_s1 + $0xb98] sm:$0xff]  }
 0x143   :  { %4066 = vmatmul.mubr.bf16.vlgmr.msra.gmra.mrb[36].mxu0 %v4922_v26  ;;  %v6458_v26 = vld [vmem:[%s8148_s1 + $0xbd0] sm:$0xff]  }
 0x144   :  { %4106 = vmatmul.mubr.bf16.vlgmr.msra.gmra.mrb[36].mxu1 %v4924_v29  ;;  %5766 = vmatpush3.bf16.msra.mxu0 %v6415_v33  ;;  %v6461_v29 = vld [vmem:[%s8148_s1 + $0xb58] sm:$0xff]   ;;  %v6465_v33 = vld [vmem:[%s8148_s1 + $0xb60] sm:$0xff]  }
 0x145   :  { %5788 = vmatpush3.bf16.msra.mxu1 %v6416_v34  ;;  %5767 = vmatprep.subr.bf16.mxu0 %v6417_v35  ;;  %v6466_v34 = vld [vmem:[%s8148_s1 + $0xbe0] sm:$0xff]  }
 0x146   :  { %5789 = vmatprep.subr.bf16.mxu1 %v6418_v36  ;;  %4145 = vmatprep.mubr.bf16.mxu0 %v4927_v14  ;;  %v6467_v35 = vld [vmem:[%s8148_s1 + $0xb20] sm:$0xff]  }
 0x147   :  { %4185 = vmatprep.mubr.bf16.mxu1 %v4929_v16 }
 0x148   :  { %5768 = vmatpush3.bf16.msra.mxu0 %v6419_v37  ;;  %v6468_v37 = vld [vmem:[%s8148_s1 + $0xba0] sm:$0xff]  }
 0x149   :  { %5790 = vmatpush3.bf16.msra.mxu1 %v6420_v38  ;;  %5769 = vmatprep.subr.bf16.mxu0 %v6421_v39 }
 0x14a   :  { %5791 = vmatprep.subr.bf16.mxu1 %v6422_v40 }
 0x14c   :  { %5770 = vmatpush3.bf16.msra.mxu0 %v6423_v41 }
 0x14d   :  { %5792 = vmatpush3.bf16.msra.mxu1 %v6424_v42  ;;  %5771 = vmatprep.subr.bf16.mxu0 %v6425_v43  ;;  %v6469_v43 = vld [vmem:[%s8148_s1 + $0xb68] sm:$0xff]  }
 0x14e   :  { %5793 = vmatprep.subr.bf16.mxu1 %v6426_v44 }
 0x150   :  { %5772 = vmatpush3.bf16.msra.mxu0 %v6427_v45  ;;  %v6470_v45 = vld [vmem:[%s8148_s1 + $0xbe8] sm:$0xff]  }
 0x151   :  { %5794 = vmatpush3.bf16.msra.mxu1 %v6428_v46  ;;  %5773 = vmatprep.subr.bf16.mxu0 %v6429_v47 }
 0x152   :  { %5795 = vmatprep.subr.bf16.mxu1 %v6430_v48  ;;  %v6471_v48 = vld [vmem:[%s8148_s1 + $0xb28] sm:$0xff]  }
 0x154   :  { %5774 = vmatpush3.bf16.msra.mxu0 %v6431_v50  ;;  %v6472_v50 = vld [vmem:[%s8148_s1 + $0xba8] sm:$0xff]  }
 0x155   :  { %5796 = vmatpush3.bf16.msra.mxu1 %v6432_v52  ;;  %5775 = vmatprep.subr.bf16.mxu0 %v6433_v55  ;;  %v6475_v55 = vld [vmem:[%s8148_s1 + $0xb30] sm:$0xff]  }
 0x156   :  { %v5473_v49 = vpop.f32.mrb[12].mxu0  ;;  %5797 = vmatprep.subr.bf16.mxu1 %v6434_v58  ;;  %v6478_v58 = vld [vmem:[%s8148_s1 + $0xbf8] sm:$0xff]  }
 0x157   :  { %v5495_v51 = vpop.f32.mrb[12].mxu1  ;;  %v5474_v53 = vpop.f32.mrb[13].mxu0 }
 0x158   :  { %v5496_v54 = vpop.f32.mrb[13].mxu1  ;;  %v5475_v56 = vadd.f32 %v5474_v53, %v5473_v49  ;;  %v5476_v59 = vpop.f32.mrb[14].mxu0  ;;  %5776 = vmatpush3.bf16.msra.mxu0 %v6435_v61  ;;  %v6473_v53 = vld [vmem:[%s8148_s1 + $0xb70] sm:$0xff]  }
 0x159   :  { %v5497_v57 = vadd.f32 %v5496_v54, %v5495_v51  ;;  %v5498_v60 = vpop.f32.mrb[14].mxu1  ;;  %v5477_v0 = vpop.f32.mrb[15].mxu0  ;;  %5798 = vmatpush3.bf16.msra.mxu1 %v6436_v63  ;;  %5777 = vmatprep.subr.bf16.mxu0 %v6437_v2  ;;  %v6474_v54 = vld [vmem:[%s8148_s1 + $0xbf0] sm:$0xff]   ;;  %v6479_v59 = vld [vmem:[%s8148_s1 + $0xb38] sm:$0xff]  }
 0x15a   :  { %v3588_v62 = vadd.f32 %v5475_v56, %v7595_v17  ;;  %v5499_v1 = vpop.f32.mrb[15].mxu1  ;;  %5799 = vmatprep.subr.bf16.mxu1 %v6438_v4  ;;  %v6449_v17 = vld [vmem:[%s8148_s1 + $0xb40] sm:$0xff]   ;;  %v6476_v56 = vld [vmem:[%s8148_s1 + $0xbb0] sm:$0xff]   ;;  %v6480_v60 = vld [vmem:[%s8148_s1 + $0xbb8] sm:$0xff]  }
 0x15b   :  { %v71_v61 = vld [vmem:[%s8147_s0 + $0xb0] sm:$0xff] }
 0x15c   :  { %v7700_v3 = vadd.f32 %v5497_v57, %v3588_v62  ;;  %5778 = vmatpush3.bf16.msra.mxu0 %v6439_v5  ;;  %v6477_v57 = vld [vmem:[%s8148_s1 + $0xb78] sm:$0xff]   ;;  %v4930_v63 = vcombine.low %v71_v61, %v71_v61  ;;  %v4931_v0 = vcombine.high %v71_v61, %v71_v61 }
 0x15d   :  { %5800 = vmatpush3.bf16.msra.mxu1 %v6440_v6  ;;  %5779 = vmatprep.subr.bf16.mxu0 %v6441_v7  ;;  %v72_v62 = vld [vmem:[%s8147_s0 + $0xb8] sm:$0xff] }
 0x15e   :  { %5801 = vmatprep.subr.bf16.mxu1 %v6442_v8  ;;  %v4932_v1 = vcombine.low %v72_v62, %v72_v62  ;;  %v4933_v2 = vcombine.high %v72_v62, %v72_v62 }
 0x160   :  { %5780 = vmatpush3.bf16.msra.mxu0 %v6443_v9 }
 0x161   :  { %5802 = vmatpush3.bf16.msra.mxu1 %v6444_v10  ;;  %5809 = vmatprep.subr.bf16.mxu0 %v6449_v17 }
 0x162   :  { %5831 = vmatprep.subr.bf16.mxu1 %v6450_v18 }
 0x163   :  { %4146 = vmatmul.mubr.bf16.vlgmr.msra.gmra.mrb[40].mxu0 %v4926_v13 }
 0x164   :  { %4186 = vmatmul.mubr.bf16.vlgmr.msra.gmra.mrb[40].mxu1 %v4928_v15  ;;  %5810 = vmatpush3.bf16.msra.mxu0 %v6451_v19 }
 0x165   :  { %5832 = vmatpush3.bf16.msra.mxu1 %v6452_v20  ;;  %5811 = vmatprep.subr.bf16.mxu0 %v6453_v21 }
 0x166   :  { %5833 = vmatprep.subr.bf16.mxu1 %v6454_v22 }
 0x168   :  { %5812 = vmatpush3.bf16.msra.mxu0 %v6455_v23 }
 0x169   :  { %5834 = vmatpush3.bf16.msra.mxu1 %v6456_v24  ;;  %5813 = vmatprep.subr.bf16.mxu0 %v6457_v25 }
 0x16a   :  { %5835 = vmatprep.subr.bf16.mxu1 %v6458_v26 }
 0x16c   :  { %5814 = vmatpush3.bf16.msra.mxu0 %v6459_v27 }
 0x16d   :  { %5836 = vmatpush3.bf16.msra.mxu1 %v6460_v28  ;;  %5815 = vmatprep.subr.bf16.mxu0 %v6461_v29 }
 0x16e   :  { %5837 = vmatprep.subr.bf16.mxu1 %v6462_v30 }
 0x170   :  { %5816 = vmatpush3.bf16.msra.mxu0 %v6463_v31 }
 0x171   :  { %5838 = vmatpush3.bf16.msra.mxu1 %v6464_v32  ;;  %5817 = vmatprep.subr.bf16.mxu0 %v6465_v33 }
 0x172   :  { %5839 = vmatprep.subr.bf16.mxu1 %v6466_v34 }
 0x174   :  { %5818 = vmatpush3.bf16.msra.mxu0 %v6467_v35 }
 0x175   :  { %5840 = vmatpush3.bf16.msra.mxu1 %v6468_v37  ;;  %5819 = vmatprep.subr.bf16.mxu0 %v6469_v43 }
 0x176   :  { %v5517_v36 = vpop.f32.mrb[16].mxu0  ;;  %5841 = vmatprep.subr.bf16.mxu1 %v6470_v45 }
 0x177   :  { %v5539_v38 = vpop.f32.mrb[16].mxu1  ;;  %v5518_v39 = vpop.f32.mrb[17].mxu0 }
 0x178   :  { %v5540_v40 = vpop.f32.mrb[17].mxu1  ;;  %v5519_v41 = vadd.f32 %v5518_v39, %v5517_v36  ;;  %v5520_v44 = vpop.f32.mrb[18].mxu0  ;;  %5820 = vmatpush3.bf16.msra.mxu0 %v6471_v48 }
 0x179   :  { %v5541_v42 = vadd.f32 %v5540_v40, %v5539_v38  ;;  %v5542_v46 = vpop.f32.mrb[18].mxu1  ;;  %v5521_v49 = vpop.f32.mrb[19].mxu0  ;;  %5842 = vmatpush3.bf16.msra.mxu1 %v6472_v50  ;;  %5821 = vmatprep.subr.bf16.mxu0 %v6473_v53 }
 0x17a   :  { %v3668_v47 = vadd.f32 %v5519_v41, %v7700_v3  ;;  %v5543_v51 = vpop.f32.mrb[19].mxu1  ;;  %5843 = vmatprep.subr.bf16.mxu1 %v6474_v54 }
 0x17c   :  { %v3708_v52 = vadd.f32 %v5541_v42, %v3668_v47  ;;  %5822 = vmatpush3.bf16.msra.mxu0 %v6475_v55 }
 0x17d   :  { %5844 = vmatpush3.bf16.msra.mxu1 %v6476_v56  ;;  %5823 = vmatprep.subr.bf16.mxu0 %v6477_v57 }
 0x17e   :  { %5845 = vmatprep.subr.bf16.mxu1 %v6478_v58 }
 0x180   :  { %5824 = vmatpush3.bf16.msra.mxu0 %v6479_v59 }
 0x181   :  { %21 = vsyncpa [#allocation3], 0  ;;  %5846 = vmatpush3.bf16.msra.mxu1 %v6480_v60  ;;  %4225 = vmatprep.mubr.bf16.mxu0 %v4931_v0  ;;  %v6509_v39 = vmov 0.0   ;;  %vm6510_vm0 = vmmov 0   ;;  %v4349_v40 = vld [vmem:[%s8150_s3] sm:$0xff]  ;;  %v4350_v41 = vld [vmem:[%s8150_s3 + $0x8] sm:$0xff] }
 0x182   :  { %4265 = vmatprep.mubr.bf16.mxu1 %v4933_v2  ;;  %5934 = vmatprep.subr.mxu0 %v6509_v39  ;;  %v4351_v42 = vld [vmem:[%s8150_s3 + $0x10] sm:$0xff]  ;;  %v6511_v43 = vmov 0.0|0.0   ;;  %v5959_v44 = vpack.c.bf16 %v4350_v41, %v4349_v40  ;;  %v4352_v45 = vld [vmem:[%s8150_s3 + $0x18] sm:$0xff]  ;;  %v4353_v47 = vld [vmem:[%s8150_s3 + $0x20] sm:$0xff]  ;;  %vm4275_vm1 = vcmask 64512   ;;  %vm4364_vm2 = vcmask 523264  }
 0x183   :  { %4226 = vmatmul.mubr.bf16.vlgmr.msra.gmra.mrb[44].mxu0 %v4930_v63  ;;  %5958 = vmatprep.subr.bf16.mxu1 %v6511_v43  ;;  %v5962_v46 = vpack.c.bf16 %v4352_v45, %v4351_v42  ;;  %v4354_v48 = vld [vmem:[%s8150_s3 + $0x28] sm:$0xff]  ;;  %v4355_v50 = vld [vmem:[%s8150_s3 + $0x30] sm:$0xff]  ;;  %v4356_v51 = vld [vmem:[%s8150_s3 + $0x38] sm:$0xff]  ;;  %vm4454_vm3 = vcmask 130048   ;;  %s6512_s30 = smov 104   ;;  %s6513_s3 = smov 120  }
 0x184   :  { %4266 = vmatmul.mubr.bf16.vlgmr.msra.gmra.mrb[44].mxu1 %v4932_v1  ;;  %5936 = vmatprep.mubr.msk.f32.mxu0 %vm6510_vm0, %v6509_v39  ;;  %v5965_v49 = vpack.c.bf16 %v4354_v48, %v4353_v47  ;;  %v4439_v42 = vld [vmem:[%s8152_s5 + $0x8] sm:$0xff]  ;;  %v4438_v45 = vld [vmem:[%s8152_s5] sm:$0xff]  ;;  %s6514_s23 = smov 16   ;;  %vm4654_vm4 = vcmask 254976   ;;  %vm4676_vm5 = vcmask 261120   ;;  %vm4640_vm6 = vcmask 58368  }
 0x185   :  { %5955 = vmatprep.mubr.msk.f32.mxu1 %vm6510_vm0, %v6509_v39  ;;  %5960 = vmatpush3.bf16.msra.mxu1 %v5959_v44  ;;  %v4547_v48 = vld [vmem:[%s8154_s7 + $0x80] sm:$0xff] }
 0x186   :  { %5961 = vmatprep.subr.bf16.mxu1 %v6511_v43 }
 0x189   :  { %5963 = vmatpush3.bf16.msra.mxu1 %v5962_v46  ;;  %v4440_v46 = vld [vmem:[%s8152_s5 + $0x10] sm:$0xff] }
 0x18a   :  { %5964 = vmatprep.subr.bf16.mxu1 %v6511_v43  ;;  %v5972_v47 = vpack.c.bf16 %v4440_v46, %v4438_v45  ;;  %v4771_v45 = vld [vmem:[%s8158_s11 + $0x90] sm:$0xff]  ;;  %v4772_v46 = vld [vmem:[%s8158_s11 + $0x98] sm:$0xff] }
 0x18d   :  { %5966 = vmatpush3.bf16.msra.mxu1 %v5965_v49  ;;  %v4548_v49 = vld [vmem:[%s8154_s7 + $0x88] sm:$0xff] }
 0x18e   :  { %5967 = vmatprep.subr.bf16.mxu1 %v6511_v43  ;;  %v4441_v43 = vld [vmem:[%s8152_s5 + $0x18] sm:$0xff] }
 0x18f   :  { %v5970_v44 = vpack.c.bf16 %v4441_v43, %v4439_v42  ;;  %v4753_v42 = vld [vmem:[%s8158_s11] sm:$0xff] }
 0x196   :  { %v5561_v3 = vpop.f32.mrb[20].mxu0 }
 0x197   :  { %v5583_v4 = vpop.f32.mrb[20].mxu1  ;;  %v5562_v5 = vpop.f32.mrb[21].mxu0 }
 0x198   :  { %v5563_v6 = vadd.f32 %v5562_v5, %v5561_v3  ;;  %v5584_v7 = vpop.f32.mrb[21].mxu1  ;;  %v5564_v8 = vpop.f32.mrb[22].mxu0 }
 0x199   :  { %v5585_v9 = vadd.f32 %v5584_v7, %v5583_v4  ;;  %v5586_v10 = vpop.f32.mrb[22].mxu1  ;;  %v5565_v11 = vpop.f32.mrb[23].mxu0 }
 0x19a   :  { %v3748_v12 = vadd.f32 %v5563_v6, %v3708_v52  ;;  %v5587_v13 = vpop.f32.mrb[23].mxu1  ;;  %v5968_v52 = vpack.c.bf16 %v4356_v51, %v4355_v50  ;;  %v5974_v50 = vpack.c.bf16 %v4548_v49, %v4547_v48  ;;  %v4531_v51 = vld [vmem:[%s8154_s7] sm:$0xff]  ;;  %v6018_v48 = vpack.c.bf16 %v4772_v46, %v4771_v45  ;;  %v4755_v49 = vld [vmem:[%s8158_s11 + $0x10] sm:$0xff]  ;;  %v4784_v46 = vld [vmem:[%s8158_s11 + $0xf8] sm:$0xff] }
 0x19b   :  { %v4783_v45 = vld [vmem:[%s8158_s11 + $0xf0] sm:$0xff] }
 0x19c   :  { %v3788_v14 = vadd.f32 %v5585_v9, %v3748_v12  ;;  %5969 = vmatpush3.bf16.msra.mxu1 %v5968_v52  ;;  %v4532_v52 = vld [vmem:[%s8154_s7 + $0x8] sm:$0xff] }
 0x1b6   :  { %v5605_v15 = vpop.f32.mrb[24].mxu0 }
 0x1b7   :  { %v5627_v16 = vpop.f32.mrb[24].mxu1  ;;  %v5606_v17 = vpop.f32.mrb[25].mxu0 }
 0x1b8   :  { %v5607_v18 = vadd.f32 %v5606_v17, %v5605_v15  ;;  %v5628_v19 = vpop.f32.mrb[25].mxu1  ;;  %v5608_v20 = vpop.f32.mrb[26].mxu0 }
 0x1b9   :  { %v5629_v21 = vadd.f32 %v5628_v19, %v5627_v16  ;;  %v5630_v22 = vpop.f32.mrb[26].mxu1  ;;  %v5609_v23 = vpop.f32.mrb[27].mxu0 }
 0x1ba   :  { %v3828_v24 = vadd.f32 %v5607_v18, %v3788_v14  ;;  %v5631_v25 = vpop.f32.mrb[27].mxu1 }
 0x1bc   :  { %v3868_v26 = vadd.f32 %v5629_v21, %v3828_v24 }
 0x1d6   :  { %v5649_v27 = vpop.f32.mrb[28].mxu0 }
 0x1d7   :  { %v5671_v28 = vpop.f32.mrb[28].mxu1  ;;  %v5650_v29 = vpop.f32.mrb[29].mxu0 }
 0x1d8   :  { %v5651_v30 = vadd.f32 %v5650_v29, %v5649_v27  ;;  %v5672_v31 = vpop.f32.mrb[29].mxu1  ;;  %v5652_v32 = vpop.f32.mrb[30].mxu0 }
 0x1d9   :  { %v5673_v33 = vadd.f32 %v5672_v31, %v5671_v28  ;;  %v5674_v34 = vpop.f32.mrb[30].mxu1  ;;  %v5653_v35 = vpop.f32.mrb[31].mxu0 }
 0x1da   :  { %v3908_v36 = vadd.f32 %v5651_v30, %v3868_v26  ;;  %v5675_v37 = vpop.f32.mrb[31].mxu1 }
 0x1dc   :  { %v3948_v38 = vadd.f32 %v5673_v33, %v3908_v36 }
 0x1f6   :  { %v5693_v53 = vpop.f32.mrb[32].mxu0 }
 0x1f7   :  { %v5715_v54 = vpop.f32.mrb[32].mxu1  ;;  %v5694_v55 = vpop.f32.mrb[33].mxu0 }
 0x1f8   :  { %v5695_v56 = vadd.f32 %v5694_v55, %v5693_v53  ;;  %v5716_v57 = vpop.f32.mrb[33].mxu1  ;;  %v5696_v58 = vpop.f32.mrb[34].mxu0  ;;  %v5319_v53 = vld [vmem:[%s8151_s4] ss:$0 sm:$0xff]  ;;  %v4550_v55 = vld [vmem:[%s8154_s7 + $0x98] sm:$0xff] }
 0x1f9   :  { %v5717_v59 = vadd.f32 %v5716_v57, %v5715_v54  ;;  %v5718_v60 = vpop.f32.mrb[34].mxu1  ;;  %v5697_v61 = vpop.f32.mrb[35].mxu0  ;;  %v4549_v54 = vld [vmem:[%s8154_s7 + $0x90] sm:$0xff]  ;;  %v5976_v57 = vpack.c.bf16 %v4532_v52, %v4531_v51  ;;  %v4773_v51 = vld [vmem:[%s8158_s11 + $0xa0] sm:$0xff]  ;;  %v4774_v52 = vld [vmem:[%s8158_s11 + $0xa8] sm:$0xff] }
 0x1fa   :  { %v3988_v62 = vadd.f32 %v5695_v56, %v3948_v38  ;;  %v5719_v63 = vpop.f32.mrb[35].mxu1  ;;  %v4274_v38 = vld [vmem:[%s8149_s2] sm:$0x3]  ;;  %v5978_v60 = vpack.c.bf16 %v4550_v55, %v4549_v54  ;;  %v4533_v61 = vld [vmem:[%s8154_s7 + $0x10] sm:$0xff]  ;;  %v6022_v54 = vpack.c.bf16 %v4774_v52, %v4773_v51 }
 0x1fb   :  { %v4551_v63 = vld [vmem:[%s8154_s7 + $0xa0] sm:$0xff] }
 0x1fc   :  { %v4028_v0 = vadd.f32 %v5717_v59, %v3988_v62  ;;  %v4534_v62 = vld [vmem:[%s8154_s7 + $0x18] sm:$0xff]  ;;  %v4757_v55 = vld [vmem:[%s8158_s11 + $0x20] sm:$0xff] }
 0x1fd   :  { %v5322_v52 = vld [vmem:[%s8155_s8] ss:$0 sm:$0xff]  ;;  %s6515_s8 = smov [#allocation2]  }
 0x216   :  { %v5737_v1 = vpop.f32.mrb[36].mxu0 }
 0x217   :  { %v5759_v2 = vpop.f32.mrb[36].mxu1  ;;  %v5738_v3 = vpop.f32.mrb[37].mxu0 }
 0x218   :  { %v5760_v4 = vpop.f32.mrb[37].mxu1  ;;  %v5739_v5 = vadd.f32 %v5738_v3, %v5737_v1  ;;  %v5740_v7 = vpop.f32.mrb[38].mxu0  ;;  %v5980_v1 = vpack.c.bf16 %v4534_v62, %v4533_v61  ;;  %v4535_v3 = vld [vmem:[%s8154_s7 + $0x20] sm:$0xff]  ;;  %v4444_v62 = vlaneseq }
 0x219   :  { %v5761_v6 = vadd.f32 %v5760_v4, %v5759_v2  ;;  %v5762_v8 = vpop.f32.mrb[38].mxu1  ;;  %v5741_v9 = vpop.f32.mrb[39].mxu0  ;;  %v4536_v4 = vld [vmem:[%s8154_s7 + $0x28] sm:$0xff] }
 0x21a   :  { %v5763_v10 = vpop.f32.mrb[39].mxu1  ;;  %v4068_v11 = vadd.f32 %v5739_v5, %v4028_v0  ;;  %v4552_v0 = vld [vmem:[%s8154_s7 + $0xa8] sm:$0xff]  ;;  %v4553_v5 = vld [vmem:[%s8154_s7 + $0xb0] sm:$0xff]  ;;  %v5984_v7 = vpack.c.bf16 %v4536_v4, %v4535_v3 }
 0x21b   :  { %v5982_v2 = vpack.c.bf16 %v4552_v0, %v4551_v63  ;;  %v4537_v9 = vld [vmem:[%s8154_s7 + $0x30] sm:$0xff]  ;;  %v4538_v10 = vld [vmem:[%s8154_s7 + $0x38] sm:$0xff]  ;;  %v8024_v63 = vshrl.u32 %v4444_v62, 7 }
 0x21c   :  { %v4108_v12 = vadd.f32 %v5761_v6, %v4068_v11  ;;  %v4554_v6 = vld [vmem:[%s8154_s7 + $0xb8] sm:$0xff]  ;;  %v4555_v11 = vld [vmem:[%s8154_s7 + $0xc0] sm:$0xff] }
 0x21d   :  { %v5986_v8 = vpack.c.bf16 %v4554_v6, %v4553_v5  ;;  %v4446_v0 = vsub.s32 0, %v8024_v63 }
 0x236   :  { %v5781_v13 = vpop.f32.mrb[40].mxu0 }
 0x237   :  { %v5803_v14 = vpop.f32.mrb[40].mxu1  ;;  %v5782_v15 = vpop.f32.mrb[41].mxu0 }
 0x238   :  { %v5783_v16 = vadd.f32 %v5782_v15, %v5781_v13  ;;  %v5804_v17 = vpop.f32.mrb[41].mxu1  ;;  %v5784_v18 = vpop.f32.mrb[42].mxu0  ;;  %v5988_v13 = vpack.c.bf16 %v4538_v10, %v4537_v9  ;;  %v4539_v15 = vld [vmem:[%s8154_s7 + $0x40] sm:$0xff]  ;;  %v4658_v9 = vld [vmem:[%s8156_s9 + $0x10] sm:$0xff] }
 0x239   :  { %v5805_v19 = vadd.f32 %v5804_v17, %v5803_v14  ;;  %v5806_v20 = vpop.f32.mrb[42].mxu1  ;;  %v5785_v21 = vpop.f32.mrb[43].mxu0  ;;  %v4557_v17 = vld [vmem:[%s8154_s7 + $0xd0] sm:$0xff]  ;;  %v4558_v18 = vld [vmem:[%s8154_s7 + $0xd8] sm:$0xff] }
 0x23a   :  { %v4148_v22 = vadd.f32 %v5783_v16, %v4108_v12  ;;  %v5807_v23 = vpop.f32.mrb[43].mxu1  ;;  %v4556_v12 = vld [vmem:[%s8154_s7 + $0xc8] sm:$0xff]  ;;  %v5994_v20 = vpack.c.bf16 %v4558_v18, %v4557_v17  ;;  %v4541_v21 = vld [vmem:[%s8154_s7 + $0x50] sm:$0xff]  ;;  %v4660_v17 = vld [vmem:[%s8156_s9 + $0x20] sm:$0xff] }
 0x23b   :  { %v5990_v14 = vpack.c.bf16 %v4556_v12, %v4555_v11  ;;  %v4540_v16 = vld [vmem:[%s8154_s7 + $0x48] sm:$0xff]  ;;  %v4559_v23 = vld [vmem:[%s8154_s7 + $0xe0] sm:$0xff]  ;;  %v4663_v12 = vld [vmem:[%s8156_s9 + $0x38] sm:$0xff] }
 0x23c   :  { %v4188_v24 = vadd.f32 %v5805_v19, %v4148_v22  ;;  %v5992_v19 = vpack.c.bf16 %v4540_v16, %v4539_v15  ;;  %v4542_v22 = vld [vmem:[%s8154_s7 + $0x58] sm:$0xff]  ;;  %v4661_v11 = vld [vmem:[%s8156_s9 + $0x28] sm:$0xff]  ;;  %v4662_v18 = vld [vmem:[%s8156_s9 + $0x30] sm:$0xff] }
 0x23d   :  { %v6010_v16 = vpack.c.bf16 %v4663_v12, %v4661_v11 }
 0x256   :  { %v5825_v25 = vpop.f32.mrb[44].mxu0 }
 0x257   :  { %v5847_v26 = vpop.f32.mrb[44].mxu1  ;;  %v5826_v27 = vpop.f32.mrb[45].mxu0 }
 0x258   :  { %v5827_v28 = vadd.f32 %v5826_v27, %v5825_v25  ;;  %v5848_v29 = vpop.f32.mrb[45].mxu1  ;;  %v5828_v30 = vpop.f32.mrb[46].mxu0  ;;  %v5996_v25 = vpack.c.bf16 %v4542_v22, %v4541_v21  ;;  %v4543_v27 = vld [vmem:[%s8154_s7 + $0x60] sm:$0xff]  ;;  %v4775_v22 = vld [vmem:[%s8158_s11 + $0xb0] sm:$0xff] }
 0x259   :  { %v5849_v31 = vadd.f32 %v5848_v29, %v5847_v26  ;;  %v5850_v32 = vpop.f32.mrb[46].mxu1  ;;  %v5829_v33 = vpop.f32.mrb[47].mxu0  ;;  %v4561_v30 = vld [vmem:[%s8154_s7 + $0xf0] sm:$0xff] }
 0x25a   :  { %v4228_v34 = vadd.f32 %v5827_v28, %v4188_v24  ;;  %v5851_v35 = vpop.f32.mrb[47].mxu1  ;;  %v4560_v24 = vld [vmem:[%s8154_s7 + $0xe8] sm:$0xff]  ;;  %v4545_v33 = vld [vmem:[%s8154_s7 + $0x70] sm:$0xff] }
 0x25b   :  { %v5998_v26 = vpack.c.bf16 %v4560_v24, %v4559_v23  ;;  %v4544_v28 = vld [vmem:[%s8154_s7 + $0x68] sm:$0xff]  ;;  %v4759_v24 = vld [vmem:[%s8158_s11 + $0x30] sm:$0xff] }
 0x25c   :  { %v4268_v36 = vadd.f32 %v5849_v31, %v4228_v34  ;;  %v6000_v29 = vpack.c.bf16 %v4544_v28, %v4543_v27  ;;  %v4562_v31 = vld [vmem:[%s8154_s7 + $0xf8] sm:$0xff]  ;;  %v4778_v27 = vld [vmem:[%s8158_s11 + $0xc8] sm:$0xff]  ;;  %v4761_v28 = vld [vmem:[%s8158_s11 + $0x40] sm:$0xff] }
 0x25d   :  { %v6002_v32 = vpack.c.bf16 %v4562_v31, %v4561_v30  ;;  %v4546_v34 = vld [vmem:[%s8154_s7 + $0x78] sm:$0xff]  ;;  %v4779_v31 = vld [vmem:[%s8158_s11 + $0xd0] sm:$0xff] }
 0x25e   :  { %v4273_v37 = vmax.f32 %v4268_v36, 0.0  ;;  %v6004_v35 = vpack.c.bf16 %v4546_v34, %v4545_v33  ;;  %v4657_v36 = vld [vmem:[%s8156_s9 + $0x8] sm:$0xff] }
 0x260   :  { %5935 = vmatpush3.msra.mxu0 %v4273_v37  ;;  %v4659_v37 = vld [vmem:[%s8156_s9 + $0x18] sm:$0xff] }
 0x261   :  { %5937 = vmatmul.mubr.msk.f32.vlgmr.msra.gmra.mrb[48].mxu0 %vm4275_vm1, %v4274_v38  ;;  %5971 = vmatprep.subr.bf16.mxu0 %v5970_v44  ;;  %v6006_v38 = vpack.c.bf16 %v4659_v37, %v4657_v36  ;;  %v4754_v44 = vld [vmem:[%s8158_s11 + $0x8] sm:$0xff]  ;;  %v4764_v36 = vld [vmem:[%s8158_s11 + $0x58] sm:$0xff]  ;;  %v4781_v37 = vld [vmem:[%s8158_s11 + $0xe0] sm:$0xff] }
 0x262   :  { %4522 = vmatprep.mubr.f32.mxu0 %v6509_v39  ;;  %5973 = vmatpush1.bf16.msra.mxu0 %v5972_v47  ;;  %v6016_v47 = vpack.c.bf16 %v4754_v44, %v4753_v42  ;;  %v4765_v42 = vld [vmem:[%s8158_s11 + $0x60] sm:$0xff] }
 0x263   :  { %5975 = vmatprep.subr.bf16.mxu0 %v5974_v50  ;;  %v4756_v50 = vld [vmem:[%s8158_s11 + $0x18] sm:$0xff] }
 0x334   :  { %v4345_v40 = vpop.f32.mrb[48].mxu0 }
 0x335   :  { %5956 = vmatmul.mubr.msk.f32.vlgmr.msra.gmra.mrb[48].mxu1 %vm4364_vm2, %v4345_v40  ;;  %v5938_v41 = vpop.f32.mrb[49].mxu0  ;;  %v4769_v40 = vld [vmem:[%s8158_s11 + $0x80] sm:$0xff] }
 0x336   :  { %v4770_v41 = vld [vmem:[%s8158_s11 + $0x88] sm:$0xff] }
 0x337   :  { %v6014_v43 = vpack.c.bf16 %v4770_v41, %v4769_v40 }
 0x339   :  { %6015 = vmatprep.subr.bf16.mxu1 %v6014_v43  ;;  %v4766_v43 = vld [vmem:[%s8158_s11 + $0x68] sm:$0xff] }
 0x33a   :  { %6017 = vmatpush3.bf16.msra.mxu1 %v6016_v47  ;;  %v6040_v44 = vpack.c.bf16 %v4766_v43, %v4765_v42  ;;  %v6042_v47 = vpack.c.bf16 %v4784_v46, %v4783_v45 }
 0x33b   :  { %6019 = vmatprep.subr.bf16.mxu1 %v6018_v48  ;;  %v4767_v48 = vld [vmem:[%s8158_s11 + $0x70] sm:$0xff] }
 0x408   :  { %v4434_v56 = vpop.f32.mrb[48].mxu1 }
 0x409   :  { %v7897_v58 = vadd.f32 %v5319_v53, %v4434_v56  ;;  %v5957_v59 = vpop.f32.mrb[49].mxu1  ;;  %v6020_v53 = vpack.c.bf16 %v4756_v50, %v4755_v49  ;;  %v4758_v56 = vld [vmem:[%s8158_s11 + $0x28] sm:$0xff]  ;;  %v4768_v49 = vld [vmem:[%s8158_s11 + $0x78] sm:$0xff] }
 0x40a   :  { %v6024_v59 = vpack.c.bf16 %v4758_v56, %v4757_v55  ;;  %v6044_v50 = vpack.c.bf16 %v4768_v49, %v4767_v48  ;;  %v4664_v56 = vld [vmem:[%s8157_s10] sm:$0x3] }
 0x40b   :  { %4642 = vrot.lane.b32.xlu0 %v7897_v58, %s6512_s30  ;;  %5321 = vmatmul.mubr.msk.f32.vlgmr.msra.gmra.mrb[50].mxu0 %vm4454_vm3, %v7897_v58 }
 0x40c   :  { %5977 = vmatpush3.bf16.msra.mxu0 %v5976_v57  ;;  %6021 = vmatpush3.bf16.msra.mxu1 %v6020_v53 }
 0x40d   :  { %5979 = vmatprep.subr.bf16.mxu0 %v5978_v60  ;;  %6023 = vmatprep.subr.bf16.mxu1 %v6022_v54 }
 0x40f   :  { %4645 = vrot.lane.b32.xlu0 %v7897_v58, %s6513_s3 }
 0x410   :  { %5981 = vmatpush3.bf16.msra.mxu0 %v5980_v1  ;;  %6025 = vmatpush3.bf16.msra.mxu1 %v6024_v59  ;;  %v4442_v1 = vld [vmem:[%s8153_s6] sm:$0x3] }
 0x411   :  { %5983 = vmatprep.subr.bf16.mxu0 %v5982_v2  ;;  %v4450_v2 = vsub.s32 1, %v8024_v63  ;;  %v4447_v3 = vrot.slane %v4442_v1, %v4446_v0 }
 0x413   :  { %v4451_v4 = vrot.slane %v4442_v1, %v4450_v2  ;;  %v4673_v59 = vrot.slane %v4664_v56, %v4450_v2 }
 0x414   :  { %5985 = vmatpush3.bf16.msra.mxu0 %v5984_v7 }
 0x415   :  { %5987 = vmatprep.subr.bf16.mxu0 %v5986_v8  ;;  %v4656_v8 = vld [vmem:[%s8156_s9] sm:$0xff] }
 0x418   :  { %5989 = vmatpush3.bf16.msra.mxu0 %v5988_v13 }
 0x419   :  { %5991 = vmatprep.subr.bf16.mxu0 %v5990_v14  ;;  %v6008_v14 = vpack.c.bf16 %v4658_v9, %v4656_v8 }
 0x41c   :  { %5993 = vmatpush3.bf16.msra.mxu0 %v5992_v19  ;;  %v6012_v19 = vpack.c.bf16 %v4662_v18, %v4660_v17 }
 0x41d   :  { %5995 = vmatprep.subr.bf16.mxu0 %v5994_v20 }
 0x420   :  { %5997 = vmatpush3.bf16.msra.mxu0 %v5996_v25  ;;  %v4777_v25 = vld [vmem:[%s8158_s11 + $0xc0] sm:$0xff] }
 0x421   :  { %5999 = vmatprep.subr.bf16.mxu0 %v5998_v26  ;;  %v6030_v30 = vpack.c.bf16 %v4778_v27, %v4777_v25 }
 0x424   :  { %6001 = vmatpush3.bf16.msra.mxu0 %v6000_v29  ;;  %v4762_v29 = vld [vmem:[%s8158_s11 + $0x48] sm:$0xff] }
 0x425   :  { %6003 = vmatprep.subr.bf16.mxu0 %v6002_v32  ;;  %v4780_v32 = vld [vmem:[%s8158_s11 + $0xd8] sm:$0xff]  ;;  %v6032_v33 = vpack.c.bf16 %v4762_v29, %v4761_v28 }
 0x426   :  { %v6034_v34 = vpack.c.bf16 %v4780_v32, %v4779_v31 }
 0x428   :  { %6005 = vmatpush3.bf16.msra.mxu0 %v6004_v35  ;;  %v4763_v35 = vld [vmem:[%s8158_s11 + $0x50] sm:$0xff] }
 0x429   :  { %6007 = vmatprep.subr.bf16.mxu0 %v6006_v38  ;;  %v4782_v38 = vld [vmem:[%s8158_s11 + $0xe8] sm:$0xff]  ;;  %v6036_v40 = vpack.c.bf16 %v4764_v36, %v4763_v35 }
 0x42a   :  { %v6038_v41 = vpack.c.bf16 %v4782_v38, %v4781_v37 }
 0x47d   :  { %v4643_v57 = vpop.permute.xlu0 %4642 }
 0x481   :  { %v4646_v60 = vpop.permute.xlu0 %4645 }
 0x482   :  { %v4648_v61 = vsel %vm4275_vm1, %v4643_v57, %v4646_v60  ;;  %v4669_v57 = vrot.slane %v4664_v56, %v4446_v0 }
 0x483   :  { %4650 = vrot.lane.b32.xlu1 %v4648_v61, %s6514_s23 }
 0x4de   :  { %v4524_v5 = vpop.f32.mrb[50].mxu0 }
 0x4df   :  { %v4525_v6 = vadd.f32 %v4524_v5, %v4447_v3  ;;  %v4526_v7 = vpop.f32.mrb[51].mxu0 }
 0x4e0   :  { %v4527_v10 = vadd.f32 %v4526_v7, %v4451_v4 }
 0x4e1   :  { %v4529_v15 = vmax.f32 %v4525_v6, 0.0 }
 0x4e2   :  { %v4530_v13 = vmax.f32 %v4527_v10, 0.0 }
 0x4e4   :  { %4634 = vmatprep.mubr.f32.mxu0 %v4530_v13 }
 0x4e5   :  { %4635 = vmatmul.mubr.f32.vlgmr.msra.gmra.mrb[52].mxu0 %v4529_v15 }
 0x4e6   :  { %6009 = vmatpush1.bf16.msra.mxu0 %v6008_v14  ;;  %4744 = vmatprep.mubr.f32.mxu0 %v6509_v39  ;;  %v4776_v39 = vld [vmem:[%s8158_s11 + $0xb8] sm:$0xff] }
 0x4e7   :  { %6011 = vmatprep.subr.bf16.mxu0 %v6010_v16  ;;  %v6026_v23 = vpack.c.bf16 %v4776_v39, %v4775_v22 }
 0x4e9   :  { %6027 = vmatprep.subr.bf16.mxu1 %v6026_v23 }
 0x4ea   :  { %6013 = vmatpush1.bf16.msra.mxu0 %v6012_v19 }
 0x4f5   :  { %v4651_v20 = vpop.permute.xlu1 %4650 }
 0x4f6   :  { %v4653_v21 = vsel %vm4454_vm3, %v7897_v58, %v4651_v20  ;;  %v4760_v58 = vld [vmem:[%s8158_s11 + $0x38] sm:$0xff]  ;;  %s4872_s11 = sshll.u32 %s6515_s8, 4  ;;  %s4873_s11 = int_to_ptr.vmem [resolvable:$true] %s4872_s11 }
 0x4f7   :  { %4655 = vst.msk [vmem:[%s8160_s13] sm:$0x3] %vm4654_vm4, %v4653_v21  ;;  %5323 = vmatmul.mubr.msk.f32.vlgmr.msra.gmra.mrb[54].mxu0 %vm4676_vm5, %v4653_v21  ;;  %v6028_v26 = vpack.c.bf16 %v4760_v58, %v4759_v24  ;;  %s6485_s28 = scalar_lea.vmem %s4873_s11, 32  ;;  %p6490_p1 = scmp.lt.s32.totalorder %s4873_s11, %s4873_s11 }
 0x4f8   :  { %p6486_p0 = scmp.ne.s32.totalorder %s4873_s11, %s6485_s28  ;;  %p6491_p2 = scmp.lt.s32.totalorder %s6485_s28, %s6485_s28 }
 0x4f9   :  { %6029 = vmatpush3.bf16.msra.mxu1 %v6028_v26 }
 0x4fa   :  { %6031 = vmatprep.subr.bf16.mxu1 %v6030_v30  ;;  %p6492_p3 = por %p6491_p2, %p6490_p1 }
 0x4fc   :  { %p6493_p4 = pnand %p6492_p3, %p6486_p0 }
 0x4fd   :  { %6033 = vmatpush3.bf16.msra.mxu1 %v6032_v33 }
 0x4fe   :  { %6035 = vmatprep.subr.bf16.mxu1 %v6034_v34 }
 0x501   :  { %6037 = vmatpush3.bf16.msra.mxu1 %v6036_v40 }
 0x502   :  { %6039 = vmatprep.subr.bf16.mxu1 %v6038_v41 }
 0x505   :  { %6041 = vmatpush3.bf16.msra.mxu1 %v6040_v44 }
 0x506   :  { %6043 = vmatprep.subr.bf16.mxu1 %v6042_v47 }
 0x509   :  { %6045 = vmatpush3.bf16.msra.mxu1 %v6044_v50 }
 0x5b8   :  { %v5896_v51 = vpop.f32.mrb[52].mxu0 }
 0x5b9   :  { %v5897_v53 = vpop.f32.mrb[53].mxu0 }
 0x5ba   :  { %v5898_v54 = vadd.f32 %v5897_v53, %v5896_v51 }
 0x5bc   :  { %v4637_v55 = vadd.f32 %v5898_v54, %v5322_v52 }
 0x5be   :  { %4641 = vst.msk [vmem:[#allocation2] sm:$0x3] %vm4640_vm6, %v4637_v55 }
 0x5ca   :  { %v4746_v60 = vpop.f32.mrb[54].mxu0 }
 0x5cb   :  { %v4747_v61 = vadd.f32 %v4746_v60, %v4669_v57  ;;  %v4748_v62 = vpop.f32.mrb[55].mxu0 }
 0x5cc   :  { %v4749_v1 = vadd.f32 %v4748_v62, %v4673_v59 }
 0x5cd   :  { %v4751_v4 = vmax.f32 %v4747_v61, 0.0 }
 0x5ce   :  { %v4752_v3 = vmax.f32 %v4749_v1, 0.0 }
 0x5d0   :  { %4856 = vmatprep.mubr.f32.mxu1 %v4752_v3 }
 0x5d1   :  { %4857 = vmatmul.mubr.f32.vlgmr.msra.gmra.mrb[50].mxu1 %v4751_v4 }
 0x5d2   :  { %6496 = shalt.err (!%p6493_p4)
}
 0x5d3   :  { %s6497_s30 = scalar_lea.hbm %s8161_s14, 32 }
 0x5d4   :  { %p6498_p5 = scmp.ne.s32.totalorder %s8161_s14, %s6497_s30  ;;  %p6501_p6 = scmp.lt.u32.totalorder %s6497_s30, %s8161_s14 }
 0x5d6   :  { %p6503_p7 = pnand %p6501_p6, %p6498_p5 }
 0x5d8   :  { %6506 = shalt.err (!%p6503_p7)
}
 0x5d9   :  { %4875 = dma.vmem_to_hbm [thread:$0]  %s4873_s11, 32, %s8161_s14, [#allocation3]   ;;  %v5324_v0 = vld [vmem:[%s8159_s12] ss:$0 sm:$0xff]  ;;  %vm4862_vm7 = vcmask 91136  }
 0x6a4   :  { %v5931_v63 = vpop.f32.mrb[50].mxu1 }
 0x6a5   :  { %v5932_v2 = vpop.f32.mrb[51].mxu1 }
 0x6a6   :  { %v5933_v5 = vadd.f32 %v5932_v2, %v5931_v63 }
 0x6a8   :  { %v4859_v6 = vadd.f32 %v5933_v5, %v5324_v0 }
 0x6aa   :  { %4863 = vst.msk [vmem:[%s8162_s15] sm:$0x3] %vm4862_vm7, %v4859_v6 }
 0x6ab   :  { %6507 = dma.done.wait [#allocation3], 32  }
 0x6ac   :  { %6508 = vsyncadd [#allocation3], 4294967264 }
 0x6ad   :  { %4885 = vsyncpa [#allocation3], 1 }

</bundles_post_ra>
